<compile_context>
chip_gen: v7x
topology: tpu7x:2x2x1
jax: 0.10.0
libtpu: 0.0.40
codegen_flags: <defaults>
</compile_context>

<pallas_src>
import functools

import numpy as np
import jax
import jax.numpy as jnp
from jax.experimental import pallas as pl
from jax.experimental.pallas import tpu as pltpu


# ----------------------------------------------------------------------------
# tiling helpers
# ----------------------------------------------------------------------------

def _round_up(x, m):
    return (x + m - 1) // m * m


def _pick_m_tile(M):
    """Choose (tm, padded_M): prefer large tiles, pad minimally (<=128 or ~12.5%)."""
    for t in (512, 256, 128):
        if M % t == 0:
            return t, M
    for t in (512, 256):
        Mp = _round_up(M, t)
        if Mp - M <= max(128, M // 8):
            return t, Mp
    return 128, _round_up(M, 128)


def _pick_tk(K, max_tk=1536):
    """Untiled K when it fits comfortably, else largest 128-multiple divisor."""
    if K <= max_tk:
        return K
    for tk in range(max_tk - max_tk % 128, 127, -128):
        if K % tk == 0:
            return tk
    return K


# ----------------------------------------------------------------------------
# Pallas kernels
# ----------------------------------------------------------------------------

def _mm_bn_kernel(a_ref, b_ref, s_ref, c_ref, o_ref, acc_ref, *, relu):
    # out = act((A @ W) * scale + bias), K-tiled accumulation in f32 scratch.
    k = pl.program_id(2)

    @pl.when(k == 0)
    def _():
        acc_ref[...] = jnp.zeros_like(acc_ref)

    acc_ref[...] += jnp.dot(a_ref[...], b_ref[...],
                            preferred_element_type=jnp.float32)

    @pl.when(k == pl.num_programs(2) - 1)
    def _():
        y = acc_ref[...] * s_ref[...] + c_ref[...]
        if relu:
            y = jnp.maximum(y, 0.0)
        o_ref[...] = y.astype(o_ref.dtype)


def _mm_bn_res_kernel(a_ref, b_ref, s_ref, c_ref, r_ref, o_ref, acc_ref, *, relu):
    # out = act((A @ W) * scale + bias + residual)
    k = pl.program_id(2)

    @pl.when(k == 0)
    def _():
        acc_ref[...] = jnp.zeros_like(acc_ref)

    acc_ref[...] += jnp.dot(a_ref[...], b_ref[...],
                            preferred_element_type=jnp.float32)

    @pl.when(k == pl.num_programs(2) - 1)
    def _():
        y = acc_ref[...] * s_ref[...] + c_ref[...] + r_ref[...].astype(jnp.float32)
        if relu:
            y = jnp.maximum(y, 0.0)
        o_ref[...] = y.astype(o_ref.dtype)


def _maxpool_kernel(p00_ref, p01_ref, p10_ref, p11_ref, o_ref):
    # Each phase ref: (1, OH+1, OW+1, C).  3x3/stride-2 max via 9 in-VMEM windows.
    oh, ow = o_ref.shape[1], o_ref.shape[2]
    phases = ((p00_ref[0], p01_ref[0]), (p10_ref[0], p11_ref[0]))
    res = None
    for i in range(3):
        di, pi = divmod(i, 2)
        for j in range(3):
            dj, pj = divmod(j, 2)
            w = phases[pi][pj][di:di + oh, dj:dj + ow, :]
            res = w if res is None else jnp.maximum(res, w)
    o_ref[0] = res


def _avgpool_kernel(x_ref, o_ref):
    # x_ref: (B, HW, cblk) bf16 -> mean over spatial in f32.
    o_ref[...] = jnp.mean(x_ref[...].astype(jnp.float32), axis=1)


# ----------------------------------------------------------------------------
# Pallas wrappers
# ----------------------------------------------------------------------------

def matmul_bn(a, w, scale, bias, residual, relu, out_dtype=jnp.bfloat16):
    """C = act(a @ w * scale + bias [+ residual]); a:(M,K) bf16, w:(K,N) bf16."""
    M, K = a.shape
    N = w.shape[1]

    tm, Mp = _pick_m_tile(M)
    tn = 256 if N % 256 == 0 else N
    tk = _pick_tk(K)

    if Mp != M:
        a = jnp.pad(a, ((0, Mp - M), (0, 0)))
        if residual is not None:
            residual = jnp.pad(residual, ((0, Mp - M), (0, 0)))

    grid = (Mp // tm, N // tn, K // tk)

    scale2 = scale.reshape(1, N).astype(jnp.float32)
    bias2 = bias.reshape(1, N).astype(jnp.float32)

    in_specs = [
        pl.BlockSpec((tm, tk), lambda i, j, k: (i, k)),
        pl.BlockSpec((tk, tn), lambda i, j, k: (k, j)),
        pl.BlockSpec((1, tn), lambda i, j, k: (0, j)),
        pl.BlockSpec((1, tn), lambda i, j, k: (0, j)),
    ]
    if residual is None:
        kernel = functools.partial(_mm_bn_kernel, relu=relu)
        args = (a, w, scale2, bias2)
        res_bytes = 0
    else:
        kernel = functools.partial(_mm_bn_res_kernel, relu=relu)
        in_specs = in_specs + [pl.BlockSpec((tm, tn), lambda i, j, k: (i, j))]
        args = (a, w, scale2, bias2, residual)
        res_bytes = Mp * N * 2

    cost = pl.CostEstimate(
        flops=2 * Mp * N * K,
        transcendentals=0,
        bytes_accessed=(Mp * K + K * N + Mp * N) * 2 + res_bytes + 8 * N,
    )

    out = pl.pallas_call(
        kernel,
        out_shape=jax.ShapeDtypeStruct((Mp, N), out_dtype),
        grid_spec=pltpu.PrefetchScalarGridSpec(
            num_scalar_prefetch=0,
            grid=grid,
            in_specs=in_specs,
            out_specs=pl.BlockSpec((tm, tn), lambda i, j, k: (i, j)),
            scratch_shapes=[pltpu.VMEM((tm, tn), jnp.float32)],
        ),
        compiler_params=pltpu.CompilerParams(
            dimension_semantics=("parallel", "parallel", "arbitrary"),
            vmem_limit_bytes=64 * 1024 * 1024),
        cost_estimate=cost,
    )(*args)

    if Mp != M:
        out = out[:M]
    return out


def extract_patches(x, kh, kw, stride, pad, pad_value=0.0):
    """im2col: x (B,H,W,C) bf16 -> (B,OH,OW,kh*kw*C) bf16, tap order (kh, kw, C)."""
    B, H, W, C = x.shape
    OH = (H + 2 * pad - kh) // stride + 1
    OW = (W + 2 * pad - kw) // stride + 1
    xp = jnp.pad(x, ((0, 0), (pad, pad), (pad, pad), (0, 0)),
                 constant_values=pad_value)
    cols = []
    for i in range(kh):
        for j in range(kw):
            cols.append(xp[:, i:i + stride * OH:stride, j:j + stride * OW:stride, :])
    return jnp.concatenate(cols, axis=-1), OH, OW


def conv_bn_act(x, p, *, stride, pad, relu, residual=None):
    """Conv2d (no bias) + folded BatchNorm [+ residual] [+ ReLU], NHWC bf16."""
    B, H, W, C = x.shape
    kh, kw = p["kh"], p["kw"]
    if kh == 1 and kw == 1 and pad == 0:
        xs = x[:, ::stride, ::stride, :] if stride > 1 else x
        OH, OW = xs.shape[1], xs.shape[2]
        A = xs.reshape(B * OH * OW, C)
    else:
        patches, OH, OW = extract_patches(x, kh, kw, stride, pad)
        A = patches.reshape(B * OH * OW, kh * kw * C)
    Kw = p["wmat"].shape[0]
    if A.shape[1] < Kw:                       # conv1: zero-pad K 147 -> 256
        A = jnp.pad(A, ((0, 0), (0, Kw - A.shape[1])))
    M = B * OH * OW
    N = p["wmat"].shape[1]
    res2d = None if residual is None else residual.reshape(M, N)
    out = matmul_bn(A, p["wmat"], p["scale"], p["bias"], res2d, relu)
    return out.reshape(B, OH, OW, N)


def maxpool_3x3_s2_p1(x):
    """MaxPool2d(kernel=3, stride=2, padding=1) on NHWC bf16 input."""
    B, H, W, C = x.shape
    OH = (H - 1) // 2 + 1
    OW = (W - 1) // 2 + 1
    # Pad with -inf so padded dims are exactly (2*OH+2, 2*OW+2), then split into
    # 4 even/odd phase views; the 9 pooling taps become unstrided in-VMEM slices.
    ph = 2 * OH + 2 - (H + 1)
    pw = 2 * OW + 2 - (W + 1)
    xp = jnp.pad(x, ((0, 0), (1, ph), (1, pw), (0, 0)),
                 constant_values=-jnp.inf)
    xr = xp.reshape(B, OH + 1, 2, OW + 1, 2, C)
    xt = jnp.transpose(xr, (0, 2, 4, 1, 3, 5))      # (B, 2, 2, OH+1, OW+1, C)
    p00, p01, p10, p11 = xt[:, 0, 0], xt[:, 0, 1], xt[:, 1, 0], xt[:, 1, 1]

    phase_spec = pl.BlockSpec((1, OH + 1, OW + 1, C), lambda b: (b, 0, 0, 0))
    return pl.pallas_call(
        _maxpool_kernel,
        out_shape=jax.ShapeDtypeStruct((B, OH, OW, C), x.dtype),
        grid=(B,),
        in_specs=[phase_spec, phase_spec, phase_spec, phase_spec],
        out_specs=pl.BlockSpec((1, OH, OW, C), lambda b: (b, 0, 0, 0)),
        compiler_params=pltpu.CompilerParams(dimension_semantics=("parallel",)),
    )(p00, p01, p10, p11)


def global_avgpool(x):
    """AdaptiveAvgPool2d((1,1)) + flatten: NHWC bf16 -> (B, C) f32."""
    B, H, W, C = x.shape
    xr = x.reshape(B, H * W, C)
    cblk = 256 if C % 256 == 0 else C
    return pl.pallas_call(
        _avgpool_kernel,
        out_shape=jax.ShapeDtypeStruct((B, C), jnp.float32),
        grid=(C // cblk,),
        in_specs=[pl.BlockSpec((B, H * W, cblk), lambda c: (0, 0, c))],
        out_specs=pl.BlockSpec((B, cblk), lambda c: (0, c)),
        compiler_params=pltpu.CompilerParams(dimension_semantics=("parallel",)),
    )(xr)


# ----------------------------------------------------------------------------
# Deterministic synthetic parameters (shapes of torchvision resnet50)
# ----------------------------------------------------------------------------

class ParamGen:
    def __init__(self, key):
        self.key = key
        self.i = 0

    def next(self):
        self.i += 1
        return jax.random.fold_in(self.key, self.i)


def init_conv_bn(pg, kh, kw, cin, cout, eps=1e-5, k_pad=None):
    fan_in = kh * kw * cin
    # PyTorch conv weight layout is (O, C, kh, kw); fold to im2col GEMM matrix.
    w = jax.random.normal(pg.next(), (cout, cin, kh, kw), jnp.float32) / np.sqrt(fan_in)
    gamma = 1.0 + 0.1 * jax.random.normal(pg.next(), (cout,), jnp.float32)
    beta = 0.1 * jax.random.normal(pg.next(), (cout,), jnp.float32)
    rmean = 0.1 * jax.random.normal(pg.next(), (cout,), jnp.float32)
    rvar = 1.0 + 0.1 * jax.random.uniform(pg.next(), (cout,), jnp.float32)
    scale = gamma / jnp.sqrt(rvar + eps)
    bias = beta - rmean * scale
    wmat = jnp.transpose(w, (2, 3, 1, 0)).reshape(kh * kw * cin, cout)
    if k_pad is not None and k_pad > wmat.shape[0]:
        wmat = jnp.pad(wmat, ((0, k_pad - wmat.shape[0]), (0, 0)))
    wmat = wmat.astype(jnp.bfloat16)            # bf16 MXU operands
    return {"wmat": wmat, "scale": scale, "bias": bias, "kh": kh, "kw": kw}


def build_params(key):
    pg = ParamGen(key)
    # conv1 im2col K = 7*7*3 = 147, zero-padded to 256 for lane-aligned loads.
    params = {"conv1": init_conv_bn(pg, 7, 7, 3, 64, k_pad=256)}
    layers = []
    in_c = 64
    # (num_blocks, mid_channels, out_channels, first_block_stride)
    cfg = [(3, 64, 256, 1), (4, 128, 512, 2), (6, 256, 1024, 2), (3, 512, 2048, 2)]
    for n_blocks, mid, out_c, stride in cfg:
        layer = []
        for b in range(n_blocks):
            s = stride if b == 0 else 1
            blk = {
                "stride": s,
                "c1": init_conv_bn(pg, 1, 1, in_c, mid),
                "c2": init_conv_bn(pg, 3, 3, mid, mid),
                "c3": init_conv_bn(pg, 1, 1, mid, out_c),
                "down": (init_conv_bn(pg, 1, 1, in_c, out_c)
                         if (s != 1 or in_c != out_c) else None),
            }
            layer.append(blk)
            in_c = out_c
        layers.append(layer)
    params["layers"] = layers
    return params


# ----------------------------------------------------------------------------
# Forward pass (matches ResNet50Fc.forward)
# ----------------------------------------------------------------------------

def resnet50fc_forward(x_nchw, params):
    # layout: input NCHW (PyTorch) -> internal NHWC, bf16 activations end-to-end.
    x = jnp.transpose(x_nchw, (0, 2, 3, 1)).astype(jnp.bfloat16)
    # conv1 -> bn1 -> relu
    x = conv_bn_act(x, params["conv1"], stride=2, pad=3, relu=True)
    # maxpool 3x3 / 2 / pad 1
    x = maxpool_3x3_s2_p1(x)
    # layer1..layer4 (bottleneck blocks)
    for layer in params["layers"]:
        for blk in layer:
            identity = x
            out = conv_bn_act(x, blk["c1"], stride=1, pad=0, relu=True)
            out = conv_bn_act(out, blk["c2"], stride=blk["stride"], pad=1, relu=True)
            if blk["down"] is not None:
                identity = conv_bn_act(x, blk["down"], stride=blk["stride"],
                                       pad=0, relu=False)
            # relu(bn3(conv3(out)) + identity), fused in one Pallas kernel
            x = conv_bn_act(out, blk["c3"], stride=1, pad=0, relu=True,
                            residual=identity)
    # adaptive avgpool (1,1) + flatten -> (B, 2048) f32
    return global_avgpool(x)


def output_num():
    return 2048


if __name__ == "__main__":
    root = jax.random.PRNGKey(0)
    params = build_params(jax.random.fold_in(root, 1))
    # Small NCHW input consistent with the module (3 input channels required).
    x = jax.random.normal(jax.random.fold_in(root, 2), (2, 3, 64, 64), jnp.float32)
    feats = resnet50fc_forward(x, params)
    feats = jax.block_until_ready(feats)
    assert feats.shape == (2, output_num()), feats.shape
    assert bool(jnp.all(jnp.isfinite(feats)))
    print("KERNEL_OK")
</pallas_src>

<mosaic_0001>
module attributes {stable_mosaic.version = 11 : i64} {
  func.func @_mm_bn_kernel(%arg0: i32, %arg1: i32, %arg2: i32, %arg3: memref<512x256xbf16, #tpu.memory_space<vmem>>, %arg4: memref<256x64xbf16, #tpu.memory_space<vmem>>, %arg5: memref<1x64xf32, #tpu.memory_space<vmem>>, %arg6: memref<1x64xf32, #tpu.memory_space<vmem>>, %arg7: memref<512x64xbf16, #tpu.memory_space<vmem>>, %arg8: memref<512x64xf32, #tpu.memory_space<vmem>>) attributes {dimension_semantics = [#tpu.dimension_semantics<parallel>, #tpu.dimension_semantics<parallel>, #tpu.dimension_semantics<arbitrary>], iteration_bounds = array<i64: 4, 1, 1>, scalar_prefetch = 0 : i64, scratch_operands = 1 : i64, tpu.core_type = #tpu.core_type<tc>, window_params = [{transform_indices = @transform_0, window_bounds = array<i64: 512, 256>}, {transform_indices = @transform_1, window_bounds = array<i64: 256, 64>}, {transform_indices = @transform_2, window_bounds = array<i64: 1, 64>}, {transform_indices = @transform_3, window_bounds = array<i64: 1, 64>}, {transform_indices = @transform_4, window_bounds = array<i64: 512, 64>}]} {
    %c0_i32 = arith.constant 0 : i32
    %0 = arith.cmpi eq, %arg2, %c0_i32 : i32
    %1 = arith.extui %0 : i1 to i32
    %c0_i32_0 = arith.constant 0 : i32
    %2 = arith.cmpi ne, %1, %c0_i32_0 : i32
    scf.if %2 {
      %cst_10 = arith.constant 0.000000e+00 : f32
      %12 = vector.broadcast %cst_10 : f32 to vector<512x64xf32>
      %c0_11 = arith.constant 0 : index
      %c0_12 = arith.constant 0 : index
      %13 = vector.load %arg8[%c0_11, %c0_12] : memref<512x64xf32, #tpu.memory_space<vmem>>, vector<512x64xf32>
      tpu.vector_store %arg8[%c0_11, %c0_12], %12 {strides = array<i32>} : memref<512x64xf32, #tpu.memory_space<vmem>>, vector<512x64xf32>,
    } else {
    }
    %c0 = arith.constant 0 : index
    %c0_1 = arith.constant 0 : index
    %3 = vector.load %arg8[%c0, %c0_1] : memref<512x64xf32, #tpu.memory_space<vmem>>, vector<512x64xf32>
    %c0_2 = arith.constant 0 : index
    %c0_3 = arith.constant 0 : index
    %4 = vector.load %arg3[%c0_2, %c0_3] : memref<512x256xbf16, #tpu.memory_space<vmem>>, vector<512x256xbf16>
    %c0_4 = arith.constant 0 : index
    %c0_5 = arith.constant 0 : index
    %5 = vector.load %arg4[%c0_4, %c0_5] : memref<256x64xbf16, #tpu.memory_space<vmem>>, vector<256x64xbf16>
    %cst = arith.constant dense<0.000000e+00> : vector<512x64xf32>
    %6 = tpu.matmul %4, %5, %cst {dimension_numbers = #tpu.dot_dimension_numbers<[1], [0], [0], [1], [0, 0, 1, 1], [], []>} : vector<512x256xbf16>, vector<256x64xbf16>, vector<512x64xf32> -> vector<512x64xf32>
    %7 = arith.addf %3, %6 : vector<512x64xf32>
    %c0_6 = arith.constant 0 : index
    %c0_7 = arith.constant 0 : index
    %8 = vector.load %arg8[%c0_6, %c0_7] : memref<512x64xf32, #tpu.memory_space<vmem>>, vector<512x64xf32>
    tpu.vector_store %arg8[%c0_6, %c0_7], %7 {strides = array<i32>} : memref<512x64xf32, #tpu.memory_space<vmem>>, vector<512x64xf32>,
    %c0_i32_8 = arith.constant 0 : i32
    %9 = arith.cmpi eq, %arg2, %c0_i32_8 : i32
    %10 = arith.extui %9 : i1 to i32
    %c0_i32_9 = arith.constant 0 : i32
    %11 = arith.cmpi ne, %10, %c0_i32_9 : i32
    scf.if %11 {
      %c0_10 = arith.constant 0 : index
      %c0_11 = arith.constant 0 : index
      %12 = vector.load %arg8[%c0_10, %c0_11] : memref<512x64xf32, #tpu.memory_space<vmem>>, vector<512x64xf32>
      %c0_12 = arith.constant 0 : index
      %c0_13 = arith.constant 0 : index
      %13 = vector.load %arg5[%c0_12, %c0_13] : memref<1x64xf32, #tpu.memory_space<vmem>>, vector<1x64xf32>
      %14 = vector.broadcast %13 : vector<1x64xf32> to vector<512x64xf32>
      %15 = arith.mulf %12, %14 : vector<512x64xf32>
      %c0_14 = arith.constant 0 : index
      %c0_15 = arith.constant 0 : index
      %16 = vector.load %arg6[%c0_14, %c0_15] : memref<1x64xf32, #tpu.memory_space<vmem>>, vector<1x64xf32>
      %17 = vector.broadcast %16 : vector<1x64xf32> to vector<512x64xf32>
      %18 = arith.addf %15, %17 : vector<512x64xf32>
      %cst_16 = arith.constant 0.000000e+00 : f32
      %19 = vector.broadcast %cst_16 : f32 to vector<512x64xf32>
      %20 = arith.maximumf %18, %19 : vector<512x64xf32>
      %21 = arith.truncf %20 : vector<512x64xf32> to vector<512x64xbf16>
      %c0_17 = arith.constant 0 : index
      %c0_18 = arith.constant 0 : index
      %22 = vector.load %arg7[%c0_17, %c0_18] : memref<512x64xbf16, #tpu.memory_space<vmem>>, vector<512x64xbf16>
      tpu.vector_store %arg7[%c0_17, %c0_18], %21 {strides = array<i32>} : memref<512x64xbf16, #tpu.memory_space<vmem>>, vector<512x64xbf16>,
    } else {
    }
    return
  }
  func.func @transform_0(%arg0: i32, %arg1: i32, %arg2: i32) -> (i32, i32) {
    %c0_i32 = arith.constant 0 : i32
    return %arg0, %arg2 : i32, i32
  }
  func.func @transform_1(%arg0: i32, %arg1: i32, %arg2: i32) -> (i32, i32) {
    %c0_i32 = arith.constant 0 : i32
    return %arg2, %arg1 : i32, i32
  }
  func.func @transform_2(%arg0: i32, %arg1: i32, %arg2: i32) -> (i32, i32) {
    %c0_i32 = arith.constant 0 : i32
    %c0_i32_0 = arith.constant 0 : i32
    return %c0_i32, %arg1 : i32, i32
  }
  func.func @transform_3(%arg0: i32, %arg1: i32, %arg2: i32) -> (i32, i32) {
    %c0_i32 = arith.constant 0 : i32
    %c0_i32_0 = arith.constant 0 : i32
    return %c0_i32, %arg1 : i32, i32
  }
  func.func @transform_4(%arg0: i32, %arg1: i32, %arg2: i32) -> (i32, i32) {
    %c0_i32 = arith.constant 0 : i32
    return %arg0, %arg1 : i32, i32
  }
}

</mosaic_0001>

<bundles_post_ra>
// kernel: tpu_custom_call.1
= control target key start
LH: loop header
LB: loop body
LE: loop exit
PB: predicated region body
PF: predicated region fallthrough
CT: control target
= control target key end

     0   :  { %9 = vsyncpa [#allocation4], 0  ;;  %s3677_s0 = inlined_call_operand.hbm [shape: bf16[2048,256], index: 0, kind: input, shape index: {}]   ;;  %s3678_s1 = inlined_call_operand.hbm [shape: bf16[256,64], index: 1, kind: input, shape index: {}]   ;;  %s3679_s2 = inlined_call_operand.hbm [shape: f32[1,64], index: 2, kind: input, shape index: {}]   ;;  %s3680_s3 = inlined_call_operand.hbm [shape: f32[1,64], index: 3, kind: input, shape index: {}]   ;;  %s3681_s4 = inlined_call_operand.hbm [shape: bf16[2048,64], index: 4, kind: output, shape index: {}]  }
   0x1   :  { %11 = vsyncpa [#allocation4 + $0x1], 0 }
   0x2   :  { %12 = vsyncpa [#allocation7], 0 }
   0x3   :  { %13 = vsyncpa [#allocation10], 0 }
   0x4   :  { %14 = vsyncpa [#allocation5], 0 }
   0x5   :  { %16 = vsyncpa [#allocation5 + $0x1], 0  ;;  %s2836_s15 = smov 0   ;;  %s2838_s16 = smov 0  }
   0x6   :  { %s2840_s17 = smov 0   ;;  %s2842_s18 = smov 0  }
   0x7   :  { %s2844_s19 = smov 0   ;;  %s2846_s20 = smov 0  }
   0x8 LB: > { %s2110_s21 = sadd.s32 4294967295, %s2796_s20   ;;  %s2111_s22 = sadd.s32 4294967294, %s2796_s20   ;;  %s2796_s20 = sphi %s2846_s20, %s22_s20   ;;  %s2792_s19 = sphi %s2844_s19, %s3707_s19   ;;  %s2788_s18 = sphi %s2842_s18, %s3706_s18   ;;  %s2784_s17 = sphi %s2840_s17, %s3705_s17   ;;  %s2780_s16 = sphi %s2838_s16, %s3704_s16   ;;  %s2776_s15 = sphi %s2836_s15, %s3703_s15  }
   0x9   : > { %p63_p0 = scmp.ne.s32.totalorder %s2780_s16, %s2776_s15  ;;  %p2870_p1 = scmp.eq.s32.totalorder %s2110_s21, 0 }
   0xa   : > { %p2874_p2 = scmp.eq.s32.totalorder %s2110_s21, 3  ;;  %p175_p3 = scmp.eq.s32.totalorder %s2111_s22, 3 }
   0xb   : > { %s3687_s23 = scalar_select %p2870_p1, 1, 0 }
   0xc   : > { %s3688_s24 = scalar_select %p2874_p2, 1, 0 }
   0xd   : > { %p2880_p4 = por %p2870_p1, %p63_p0  ;;  %p2112_p5 = scmp.ge.s32.totalorder %s2796_s20, 1 }
   0xe   : > { %p2885_p6 = por %p175_p3, %p63_p0  ;;  %p182_p7 = scmp.lt.s32.totalorder %s2796_s20, 5 }
   0xf   : > { %s3689_s25 = scalar_select %p2880_p4, 1, 0 }
  0x10   : > { %s3690_s26 = scalar_select %p2885_p6, 1, 0 }
  0x11   : > { %p2890_p8 = pnand %p2112_p5, %p182_p7  ;;  %s2798_s28 = smov [#allocation6]  }
  0x12   : > { %3691 = sst [smem:[#allocation16_spill]] %s3690_s26  ;;  %s198_s29 = sshll.u32 %s2798_s28, 4  ;;  %s2894_s29 = int_to_ptr.vmem [resolvable:$true] %s198_s29 }
  0x13   : > { %s3692_s27 = scalar_select %p2890_p8, 1, 0 }
  0x14   : > { %p2393_p9 = pneg %p2890_p8  ;;  %s2799_s5 = smov [#allocation8]  }
  0x15   : > { %s214_s6 = sshll.u32 %s2799_s5, 4  ;;  %s2800_s7 = smov [#allocation9]   ;;  %s2904_s6 = int_to_ptr.vmem [resolvable:$true] %s214_s6 }
  0x16   : > { %p2900_p10 = pnand %p2393_p9, %p2870_p1  ;;  %s2906_s8 = sshll.u32 %s2800_s7, 4  ;;  %s228_s8 = int_to_ptr.vmem [resolvable:$true] %s2906_s8 }
  0x17   : > { %s2592_s11 = scalar_lea.hbm %s3678_s1, 2048 }
  0x18   : > { %p2593_p11 = scmp.ne.s32.totalorder %s3678_s1, %s2592_s11  ;;  %p2916_p12 = pneg %p2900_p10 }
  0x19   : > { %p2599_p3 = scmp.lt.u32.totalorder %s2592_s11, %s3678_s1 }
  0x1a   : > { %p2595_p13 = pnand %p2916_p12, %p2593_p11 }
  0x1c   : > { %p2596_p0 = pneg %p2595_p13 }
  0x1e   : > { %p2601_p5 = pnand %p2599_p3, %p2596_p0 }
  0x20   : > { %2604 = shalt.err (!%p2601_p5)
}
  0x21   : > { %s2605_s28 = scalar_lea.vmem %s2894_s29, 2048  ;;  %p2613_p1 = scmp.lt.s32.totalorder %s2894_s29, %s2894_s29 }
  0x22   : > { %p2606_p7 = scmp.ne.s32.totalorder %s2894_s29, %s2605_s28  ;;  %p2614_p4 = scmp.lt.s32.totalorder %s2605_s28, %s2605_s28 }
  0x24   : > { %p2608_p9 = pnand %p2606_p7, %p2916_p12  ;;  %p2615_p11 = por %p2614_p4, %p2613_p1 }
  0x26   : > { %p2609_p6 = pneg %p2608_p9 }
  0x28   : > { %p2616_p13 = pnand %p2615_p11, %p2609_p6 }
  0x2a   : > { %2619 = shalt.err (!%p2616_p13)
}
  0x2b   : > { %s2801_s5 = smov 64   ;;  %s2802_s7 = smov 4  }
  0x2c   : > { %2396 = dma.hbm_to_vmem [thread:$0]  (!%p2900_p10), %s3678_s1, 2048, %s2894_s29, [#allocation7], %s2801_s5, %s2801_s5, %s2802_s7  }
  0x2d   : > { %s2620_s13 = scalar_lea.hbm %s3679_s2, 16 }
  0x2e   : > { %p2621_p1 = scmp.ne.s32.totalorder %s3679_s2, %s2620_s13  ;;  %p2627_p0 = scmp.lt.u32.totalorder %s2620_s13, %s3679_s2 }
  0x30   : > { %p2623_p4 = pnand %p2621_p1, %p2916_p12 }
  0x32   : > { %p2624_p6 = pneg %p2623_p4 }
  0x34   : > { %p2629_p3 = pnand %p2627_p0, %p2624_p6 }
  0x36   : > { %2632 = shalt.err (!%p2629_p3)
}
  0x37   : > { %s2633_s29 = scalar_lea.vmem %s2904_s6, 16  ;;  %s2640_s5 = scalar_lea.vmem %s2904_s6, 32 }
  0x38   : > { %p2634_p5 = scmp.ne.s32.totalorder %s2904_s6, %s2633_s29  ;;  %p2641_p11 = scmp.lt.s32.totalorder %s2904_s6, %s2904_s6 }
  0x39   : > { %p2642_p13 = scmp.lt.s32.totalorder %s2640_s5, %s2633_s29 }
  0x3a   : > { %p2636_p7 = pnand %p2634_p5, %p2916_p12 }
  0x3b   : > { %p2643_p1 = por %p2642_p13, %p2641_p11 }
  0x3c   : > { %p2637_p9 = pneg %p2636_p7 }
  0x3e   : > { %p2644_p4 = pnand %p2643_p1, %p2637_p9 }
  0x40   : > { %2647 = shalt.err (!%p2644_p4)
}
  0x41   : > { %2399 = dma.hbm_to_vmem [thread:$0]  (!%p2900_p10), %s3679_s2, 16, %s2904_s6, [#allocation7]  }
  0x42   : > { %s2648_s11 = scalar_lea.hbm %s3680_s3, 16 }
  0x43   : > { %p2649_p6 = scmp.ne.s32.totalorder %s3680_s3, %s2648_s11  ;;  %p2655_p5 = scmp.lt.u32.totalorder %s2648_s11, %s3680_s3 }
  0x45   : > { %p2651_p0 = pnand %p2649_p6, %p2916_p12 }
  0x47   : > { %p2652_p3 = pneg %p2651_p0 }
  0x49   : > { %p2657_p7 = pnand %p2655_p5, %p2652_p3 }
  0x4b   : > { %2660 = shalt.err (!%p2657_p7)
}
  0x4c   : > { %s2661_s28 = scalar_lea.vmem %s228_s8, 16  ;;  %s2668_s6 = scalar_lea.vmem %s228_s8, 32 }
  0x4d   : > { %p2662_p9 = scmp.ne.s32.totalorder %s228_s8, %s2661_s28  ;;  %p2669_p1 = scmp.lt.s32.totalorder %s228_s8, %s228_s8 }
  0x4e   : > { %p2670_p4 = scmp.lt.s32.totalorder %s2668_s6, %s2661_s28 }
  0x4f   : > { %p2664_p11 = pnand %p2662_p9, %p2916_p12 }
  0x50   : > { %p2671_p8 = por %p2670_p4, %p2669_p1 }
  0x51   : > { %p2665_p13 = pneg %p2664_p11 }
  0x53   : > { %p2672_p2 = pnand %p2671_p8, %p2665_p13 }
  0x55   : > { %2675 = shalt.err (!%p2672_p2)
}
  0x56   : > { %2402 = dma.hbm_to_vmem [thread:$0]  (!%p2900_p10), %s3680_s3, 16, %s228_s8, [#allocation10]  }
  0x57   : > { %s50_s14 = sadd.s32 1, %s2784_s17  ;;  %s41_s26 = sadd.s32 1, %s2792_s19 }
  0x58   : > { %p57_p2 = scmp.ne.s32.totalorder %s2784_s17, %s2780_s16  ;;  %p43_p8 = scmp.ge.s32.totalorder %s41_s26, 4 }
  0x59   : > { %p58_p12 = scmp.eq.s32.totalorder %s2796_s20, 0  ;;  %p3695_p6 = scmp.ne.s32.totalorder %s3688_s24, 0 }
  0x5a   : > { %p2414_p3 = scmp.lt.s32.totalorder %s2796_s20, 4  ;;  %s3709_s26 = smov (%p43_p8, %s41_s26), 0 }
  0x5b   : > { %p2987_p0 = por %p3695_p6, %p57_p2  ;;  %p59_p5 = por %p58_p12, %p57_p2 }
  0x5c   : > { %s238_s7 = sand.u32 1, %s2784_s17   ;;  %s45_s9 = ssub.s32 %s2792_s19, %s3709_s26 }
  0x5d   : > { %p48_p7 = scmp.eq.s32.totalorder %s45_s9, 0  ;;  %s2117_s8 = sshll.u32 %s238_s7, 9 }
  0x5e   : > { %s2279_s10 = sshll.u32 %s2792_s19, 13  ;;  %s242_s21 = scalar_lea.vmem [#allocation3], %s2117_s8 }
  0x5f   : > { %s2999_s11 = scalar_select %p48_p7, %s2784_s17, %s50_s14  }
  0x60   : > { %s3004_s24 = scalar_lea.hbm %s3677_s0, %s2279_s10  ;;  %s252_s22 = sshll.u32 %s242_s21, 4  ;;  %s3006_s22 = int_to_ptr.vmem [resolvable:$true] %s252_s22 }
  0x61   : > { %p3010_p10 = pnand %p2414_p3, %p59_p5  ;;  %s3014_s6 = scalar_lea.sflag [#allocation4], %s238_s7 }
  0x62   : > { %s2676_s29 = scalar_lea.hbm %s3004_s24, 8192  ;;  %s2681_s9 = scalar_lea.hbm %s3677_s0, 32768 }
  0x63   : > { %p2677_p9 = scmp.ne.s32.totalorder %s3004_s24, %s2676_s29  ;;  %p2678_p11 = pneg %p3010_p10 }
  0x64   : > { %p2682_p4 = scmp.lt.u32.totalorder %s3004_s24, %s3677_s0  ;;  %p2683_p2 = scmp.lt.u32.totalorder %s2681_s9, %s2676_s29 }
  0x65   : > { %p2679_p13 = pnand %p2678_p11, %p2677_p9  ;;  %p2685_p12 = scmp.lt.u32.totalorder %s2676_s29, %s3004_s24 }
  0x66   : > { %p2684_p8 = por %p2683_p2, %p2682_p4 }
  0x67   : > { %p2680_p1 = pneg %p2679_p13 }
  0x68   : > { %p2686_p6 = por %p2685_p12, %p2684_p8 }
  0x6a   : > { %p2687_p3 = pnand %p2686_p6, %p2680_p1 }
  0x6c   : > { %2690 = shalt.err (!%p2687_p3)
}
  0x6d   : > { %s2691_s7 = scalar_lea.vmem %s3006_s22, 8192  ;;  %s2803_s12 = smov [#allocation3]  }
  0x6e   : > { %p2692_p5 = scmp.ne.s32.totalorder %s3006_s22, %s2691_s7  ;;  %s2696_s13 = sshll.u32 %s2803_s12, 4  ;;  %s2697_s13 = int_to_ptr.vmem [resolvable:$false] %s2696_s13 }
  0x6f   : > { %s2698_s21 = scalar_lea.vmem %s2697_s13, 16384  ;;  %p2699_p13 = scmp.lt.s32.totalorder %s3006_s22, %s2697_s13 }
  0x70   : > { %p2694_p7 = pnand %p2692_p5, %p2678_p11  ;;  %p2700_p4 = scmp.lt.s32.totalorder %s2698_s21, %s2691_s7 }
  0x72   : > { %p2695_p9 = pneg %p2694_p7  ;;  %p2701_p2 = por %p2700_p4, %p2699_p13 }
  0x74   : > { %p2702_p8 = pnand %p2701_p2, %p2695_p9 }
  0x76   : > { %2705 = shalt.err (!%p2702_p8)
}
  0x77   : > { %s2804_s29 = smov 128   ;;  %s2805_s5 = smov 8  }
  0x78   : > { %2406 = dma.hbm_to_vmem [thread:$0]  (!%p3010_p10), %s3004_s24, 8192, %s3006_s22, %s3014_s6, %s2804_s29, %s2804_s29, %s2805_s5  }
  0x79   : > { %p3698_p11 = scmp.ne.s32.totalorder %s3692_s27, 0 }
  0x7a   : > { %s3045_s14 = sand.u32 (!%p3698_p11), 1, %s2780_s16   ;;  %p3699_p1 = scmp.ne.s32.totalorder (!%p3698_p11), %s3689_s25, 0 }
  0x7b   : > { %264 = sbr.rel (%p3698_p11) target bundleno = 571 (0x23b), region = 36  ;;  %s2122_s9 = sshll.u32 (!%p3698_p11), %s3045_s14, 9 }
  0x7c   : > { %s267_s8 = scalar_lea.sflag (!%p3698_p11), [#allocation4], %s3045_s14  ;;  %s3049_s10 = scalar_lea.vmem (!%p3698_p11), [#allocation3], %s2122_s9 }
  0x82   : > { %2759 = dma.done.wait (%p3699_p1), %s267_s8, 8192  }
  0x83   : > { %2761 = vsyncadd (%p3699_p1), %s267_s8, 4294959104  ;;  %p3700_p10 = scmp.ne.s32.totalorder %s3687_s23, 0 }
  0x85   : > { %2763 = dma.done.wait (%p3700_p10), [#allocation7], 2064  }
  0x86   : > { %2765 = vsyncadd (%p3700_p10), [#allocation7], 4294965232 }
  0x87   : > { %2767 = dma.done.wait (%p3700_p10), [#allocation10], 16  }
  0x88   : > { %2769 = vsyncadd (%p3700_p10), [#allocation10], 4294967280  ;;  %v2806_v0 = vmov 0   ;;  %v2478_v1 = vld [vmem:[#allocation6] sm:$0xff]   ;;  %v2479_v2 = vld [vmem:[#allocation6 + $0x8] sm:$0xff]   ;;  %vm316_vm0 = vcmask 523264  }
  0x89   : > { %957 = vmatprep.subr.bf16.mxu0 %v2806_v0  ;;  %2345 = vmatprep.subr.bf16.mxu1 %v2806_v0  ;;  %v2480_v3 = vld [vmem:[#allocation6 + $0x10] sm:$0xff]   ;;  %v2481_v4 = vld [vmem:[#allocation6 + $0x18] sm:$0xff]   ;;  %v2482_v5 = vld [vmem:[#allocation6 + $0x20] sm:$0xff]   ;;  %v2807_v19 = vmov 0.0   ;;  %s2126_s23 = sshll.u32 %s3045_s14, 8  ;;  %vm1904_vm1 = vcmask 519168  }
  0x8a   : > { %958 = vmatpush1.bf16.msra.mxu0 %v2478_v1  ;;  %2361 = vmatpush1.bf16.msra.mxu1 %v2478_v1  ;;  %v2496_v6 = vld [vmem:[%s3049_s10 + $0x4] ss:$8 sps:$4 sm:$0xff]   ;;  %v2484_v9 = vld [vmem:[#allocation6 + $0x30] sm:$0xff]   ;;  %v2485_v10 = vld [vmem:[#allocation6 + $0x38] sm:$0xff]   ;;  %317 = vst.msk [vmem:[#allocation2] sm:$0xff] %vm316_vm0, %v2807_v19  ;;  %s3312_s25 = scalar_lea.vmem [#allocation11], %s2126_s23 }
  0x8b   : > { %959 = vmatprep.subr.bf16.mxu0 %v2806_v0  ;;  %2346 = vmatprep.subr.bf16.mxu1 %v2806_v0  ;;  %v2483_v7 = vld [vmem:[#allocation6 + $0x28] sm:$0xff]   ;;  %v2486_v11 = vld [vmem:[#allocation6 + $0x40] sm:$0xff]   ;;  %v2488_v13 = vld [vmem:[#allocation6 + $0x50] sm:$0xff]   ;;  %318 = vst.msk [vmem:[#allocation2 + $0x8] sm:$0xff] %vm316_vm0, %v2807_v19  ;;  %s2344_s27 = sshll.u32 %s2788_s18, 12  ;;  %s1984_s24 = sshll.u32 %s3312_s25, 4  ;;  %s3621_s24 = int_to_ptr.vmem [resolvable:$true] %s1984_s24 }
  0x8c   : > { %v2499_v8 = vld [vmem:[%s3049_s10 + $0x104] ss:$8 sps:$4 sm:$0xff]   ;;  %989 = vmatprep.mubr.bf16.mxu0 %v2496_v6  ;;  %v2489_v14 = vld [vmem:[#allocation6 + $0x58] sm:$0xff]   ;;  %v2492_v17 = vld [vmem:[#allocation6 + $0x70] sm:$0xff]   ;;  %319 = vst.msk [vmem:[#allocation2 + $0x10] sm:$0xff] %vm316_vm0, %v2807_v19  ;;  %s3619_s6 = scalar_lea.hbm %s3681_s4, %s2344_s27  ;;  %s1970_s18 = scalar_lea.sflag [#allocation5], %s3045_s14 }
  0x8d   : > { %1117 = vmatprep.mubr.bf16.mxu1 %v2499_v8  ;;  %v2487_v12 = vld [vmem:[#allocation6 + $0x48] sm:$0xff]   ;;  %v2490_v15 = vld [vmem:[#allocation6 + $0x60] sm:$0xff]   ;;  %v3095_v18 = vld [vmem:[#allocation6 + $0x78] sm:$0xff]   ;;  %320 = vst.msk [vmem:[#allocation2 + $0x18] sm:$0xff] %vm316_vm0, %v2807_v19  ;;  %s2706_s7 = scalar_lea.vmem %s3621_s24, 4096  ;;  %s2808_s12 = smov [#allocation11]  }
  0x8e   : > { %960 = vmatpush1.bf16.msra.mxu0 %v2479_v2  ;;  %2362 = vmatpush1.bf16.msra.mxu1 %v2479_v2  ;;  %v2491_v16 = vld [vmem:[#allocation6 + $0x68] sm:$0xff]   ;;  %321 = vst.msk [vmem:[#allocation2 + $0x20] sm:$0xff] %vm316_vm0, %v2807_v19  ;;  %322 = vst.msk [vmem:[#allocation2 + $0x28] sm:$0xff] %vm316_vm0, %v2807_v19  ;;  %v2500_v22 = vld [vmem:[%s3049_s10 + $0x14] ss:$8 sps:$4 sm:$0xff]   ;;  %p2707_p12 = scmp.ne.s32.totalorder %s3621_s24, %s2706_s7  ;;  %s2710_s13 = sshll.u32 %s2808_s12, 4  ;;  %s2711_s13 = int_to_ptr.vmem [resolvable:$false] %s2710_s13 }
  0x8f   : > { %961 = vmatprep.subr.bf16.mxu0 %v2806_v0  ;;  %2347 = vmatprep.subr.bf16.mxu1 %v2806_v0  ;;  %323 = vst.msk [vmem:[#allocation2 + $0x30] sm:$0xff] %vm316_vm0, %v2807_v19  ;;  %324 = vst.msk [vmem:[#allocation2 + $0x38] sm:$0xff] %vm316_vm0, %v2807_v19  ;;  %v2494_v20 = vld [vmem:[%s3049_s10] ss:$8 sps:$4 sm:$0xff]   ;;  %v2502_v23 = vld [vmem:[%s3049_s10 + $0x114] ss:$8 sps:$4 sm:$0xff]   ;;  %p2713_p5 = scmp.lt.s32.totalorder %s3621_s24, %s2711_s13 }
  0x90   : > { %325 = vst.msk [vmem:[#allocation2 + $0x40] sm:$0xff] %vm316_vm0, %v2807_v19  ;;  %326 = vst.msk [vmem:[#allocation2 + $0x48] sm:$0xff] %vm316_vm0, %v2807_v19  ;;  %v2497_v21 = vld [vmem:[%s3049_s10 + $0x100] ss:$8 sps:$4 sm:$0xff]   ;;  %v2504_v24 = vld [vmem:[%s3049_s10 + $0x10] ss:$8 sps:$4 sm:$0xff]   ;;  %p2708_p6 = pnand %p2707_p12, %p2987_p0 }
  0x91   : > { %327 = vst.msk [vmem:[#allocation2 + $0x50] sm:$0xff] %vm316_vm0, %v2807_v19  ;;  %328 = vst.msk [vmem:[#allocation2 + $0x58] sm:$0xff] %vm316_vm0, %v2807_v19  ;;  %v2505_v25 = vld [vmem:[%s3049_s10 + $0x110] ss:$8 sps:$4 sm:$0xff]   ;;  %v2506_v26 = vld [vmem:[%s3049_s10 + $0x24] ss:$8 sps:$4 sm:$0xff]  }
  0x92   : > { %962 = vmatpush1.bf16.msra.mxu0 %v2480_v3  ;;  %2363 = vmatpush1.bf16.msra.mxu1 %v2480_v3  ;;  %329 = vst.msk [vmem:[#allocation2 + $0x60] sm:$0xff] %vm316_vm0, %v2807_v19  ;;  %330 = vst.msk [vmem:[#allocation2 + $0x68] sm:$0xff] %vm316_vm0, %v2807_v19  ;;  %v2508_v27 = vld [vmem:[%s3049_s10 + $0x124] ss:$8 sps:$4 sm:$0xff]   ;;  %v2510_v28 = vld [vmem:[%s3049_s10 + $0x20] ss:$8 sps:$4 sm:$0xff]   ;;  %p2709_p3 = pneg %p2708_p6 }
  0x93   : > { %963 = vmatprep.subr.bf16.mxu0 %v2806_v0  ;;  %2348 = vmatprep.subr.bf16.mxu1 %v2806_v0  ;;  %331 = vst.msk [vmem:[#allocation2 + $0x70] sm:$0xff] %vm316_vm0, %v2807_v19  ;;  %332 = vst.msk [vmem:[#allocation2 + $0x78] sm:$0xff] %vm316_vm0, %v2807_v19  ;;  %v2511_v29 = vld [vmem:[%s3049_s10 + $0x120] ss:$8 sps:$4 sm:$0xff]   ;;  %v2512_v30 = vld [vmem:[%s3049_s10 + $0x34] ss:$8 sps:$4 sm:$0xff]  }
  0x94   : > { %333 = vst.msk [vmem:[#allocation2 + $0x80] sm:$0xff] %vm316_vm0, %v2807_v19  ;;  %334 = vst.msk [vmem:[#allocation2 + $0x88] sm:$0xff] %vm316_vm0, %v2807_v19  ;;  %v2514_v31 = vld [vmem:[%s3049_s10 + $0x134] ss:$8 sps:$4 sm:$0xff]   ;;  %v2516_v32 = vld [vmem:[%s3049_s10 + $0x30] ss:$8 sps:$4 sm:$0xff]  }
  0x95   : > { %335 = vst.msk [vmem:[#allocation2 + $0x90] sm:$0xff] %vm316_vm0, %v2807_v19  ;;  %336 = vst.msk [vmem:[#allocation2 + $0x98] sm:$0xff] %vm316_vm0, %v2807_v19  ;;  %v2517_v33 = vld [vmem:[%s3049_s10 + $0x130] ss:$8 sps:$4 sm:$0xff]   ;;  %v2518_v34 = vld [vmem:[%s3049_s10 + $0x44] ss:$8 sps:$4 sm:$0xff]  }
  0x96   : > { %964 = vmatpush1.bf16.msra.mxu0 %v2481_v4  ;;  %2364 = vmatpush1.bf16.msra.mxu1 %v2481_v4  ;;  %337 = vst.msk [vmem:[#allocation2 + $0xa0] sm:$0xff] %vm316_vm0, %v2807_v19  ;;  %338 = vst.msk [vmem:[#allocation2 + $0xa8] sm:$0xff] %vm316_vm0, %v2807_v19  ;;  %v2520_v35 = vld [vmem:[%s3049_s10 + $0x144] ss:$8 sps:$4 sm:$0xff]   ;;  %v2522_v36 = vld [vmem:[%s3049_s10 + $0x40] ss:$8 sps:$4 sm:$0xff]  }
  0x97   : > { %965 = vmatprep.subr.bf16.mxu0 %v2806_v0  ;;  %2349 = vmatprep.subr.bf16.mxu1 %v2806_v0  ;;  %339 = vst.msk [vmem:[#allocation2 + $0xb0] sm:$0xff] %vm316_vm0, %v2807_v19  ;;  %340 = vst.msk [vmem:[#allocation2 + $0xb8] sm:$0xff] %vm316_vm0, %v2807_v19  ;;  %v2523_v37 = vld [vmem:[%s3049_s10 + $0x140] ss:$8 sps:$4 sm:$0xff]   ;;  %v2524_v38 = vld [vmem:[%s3049_s10 + $0x54] ss:$8 sps:$4 sm:$0xff]  }
  0x98   : > { %341 = vst.msk [vmem:[#allocation2 + $0xc0] sm:$0xff] %vm316_vm0, %v2807_v19  ;;  %342 = vst.msk [vmem:[#allocation2 + $0xc8] sm:$0xff] %vm316_vm0, %v2807_v19  ;;  %v2526_v39 = vld [vmem:[%s3049_s10 + $0x154] ss:$8 sps:$4 sm:$0xff]   ;;  %v2528_v40 = vld [vmem:[%s3049_s10 + $0x50] ss:$8 sps:$4 sm:$0xff]  }
  0x99   : > { %343 = vst.msk [vmem:[#allocation2 + $0xd0] sm:$0xff] %vm316_vm0, %v2807_v19  ;;  %344 = vst.msk [vmem:[#allocation2 + $0xd8] sm:$0xff] %vm316_vm0, %v2807_v19  ;;  %v2529_v41 = vld [vmem:[%s3049_s10 + $0x150] ss:$8 sps:$4 sm:$0xff]   ;;  %v2530_v42 = vld [vmem:[%s3049_s10 + $0x64] ss:$8 sps:$4 sm:$0xff]  }
  0x9a   : > { %966 = vmatpush1.bf16.msra.mxu0 %v2482_v5  ;;  %2365 = vmatpush1.bf16.msra.mxu1 %v2482_v5  ;;  %345 = vst.msk [vmem:[#allocation2 + $0xe0] sm:$0xff] %vm316_vm0, %v2807_v19  ;;  %346 = vst.msk [vmem:[#allocation2 + $0xe8] sm:$0xff] %vm316_vm0, %v2807_v19  ;;  %v2532_v43 = vld [vmem:[%s3049_s10 + $0x164] ss:$8 sps:$4 sm:$0xff]   ;;  %v2534_v44 = vld [vmem:[%s3049_s10 + $0x60] ss:$8 sps:$4 sm:$0xff]  }
  0x9b   : > { %967 = vmatprep.subr.bf16.mxu0 %v2806_v0  ;;  %2350 = vmatprep.subr.bf16.mxu1 %v2806_v0  ;;  %347 = vst.msk [vmem:[#allocation2 + $0xf0] sm:$0xff] %vm316_vm0, %v2807_v19  ;;  %348 = vst.msk [vmem:[#allocation2 + $0xf8] sm:$0xff] %vm316_vm0, %v2807_v19  ;;  %v2535_v45 = vld [vmem:[%s3049_s10 + $0x160] ss:$8 sps:$4 sm:$0xff]   ;;  %v2536_v46 = vld [vmem:[%s3049_s10 + $0x74] ss:$8 sps:$4 sm:$0xff]  }
  0x9c   : > { %349 = vst.msk [vmem:[#allocation2 + $0x100] sm:$0xff] %vm316_vm0, %v2807_v19  ;;  %350 = vst.msk [vmem:[#allocation2 + $0x108] sm:$0xff] %vm316_vm0, %v2807_v19  ;;  %v2538_v47 = vld [vmem:[%s3049_s10 + $0x174] ss:$8 sps:$4 sm:$0xff]   ;;  %v2540_v48 = vld [vmem:[%s3049_s10 + $0x70] ss:$8 sps:$4 sm:$0xff]  }
  0x9d   : > { %351 = vst.msk [vmem:[#allocation2 + $0x110] sm:$0xff] %vm316_vm0, %v2807_v19  ;;  %352 = vst.msk [vmem:[#allocation2 + $0x118] sm:$0xff] %vm316_vm0, %v2807_v19  ;;  %v2541_v49 = vld [vmem:[%s3049_s10 + $0x170] ss:$8 sps:$4 sm:$0xff]   ;;  %v2542_v50 = vld [vmem:[%s3049_s10 + $0x84] ss:$8 sps:$4 sm:$0xff]  }
  0x9e   : > { %968 = vmatpush1.bf16.msra.mxu0 %v2483_v7  ;;  %2366 = vmatpush1.bf16.msra.mxu1 %v2483_v7  ;;  %353 = vst.msk [vmem:[#allocation2 + $0x120] sm:$0xff] %vm316_vm0, %v2807_v19  ;;  %354 = vst.msk [vmem:[#allocation2 + $0x128] sm:$0xff] %vm316_vm0, %v2807_v19  ;;  %v2544_v51 = vld [vmem:[%s3049_s10 + $0x184] ss:$8 sps:$4 sm:$0xff]   ;;  %v2546_v52 = vld [vmem:[%s3049_s10 + $0x80] ss:$8 sps:$4 sm:$0xff]  }
  0x9f   : > { %969 = vmatprep.subr.bf16.mxu0 %v2806_v0  ;;  %2351 = vmatprep.subr.bf16.mxu1 %v2806_v0  ;;  %355 = vst.msk [vmem:[#allocation2 + $0x130] sm:$0xff] %vm316_vm0, %v2807_v19  ;;  %356 = vst.msk [vmem:[#allocation2 + $0x138] sm:$0xff] %vm316_vm0, %v2807_v19  ;;  %v2547_v53 = vld [vmem:[%s3049_s10 + $0x180] ss:$8 sps:$4 sm:$0xff]   ;;  %v2548_v54 = vld [vmem:[%s3049_s10 + $0x94] ss:$8 sps:$4 sm:$0xff]  }
  0xa0   : > { %357 = vst.msk [vmem:[#allocation2 + $0x140] sm:$0xff] %vm316_vm0, %v2807_v19  ;;  %358 = vst.msk [vmem:[#allocation2 + $0x148] sm:$0xff] %vm316_vm0, %v2807_v19  ;;  %v2550_v55 = vld [vmem:[%s3049_s10 + $0x194] ss:$8 sps:$4 sm:$0xff]   ;;  %v2552_v56 = vld [vmem:[%s3049_s10 + $0x90] ss:$8 sps:$4 sm:$0xff]  }
  0xa1   : > { %359 = vst.msk [vmem:[#allocation2 + $0x150] sm:$0xff] %vm316_vm0, %v2807_v19  ;;  %360 = vst.msk [vmem:[#allocation2 + $0x158] sm:$0xff] %vm316_vm0, %v2807_v19  ;;  %v2553_v57 = vld [vmem:[%s3049_s10 + $0x190] ss:$8 sps:$4 sm:$0xff]   ;;  %v2554_v58 = vld [vmem:[%s3049_s10 + $0xa4] ss:$8 sps:$4 sm:$0xff]  }
  0xa2   : > { %970 = vmatpush1.bf16.msra.mxu0 %v2484_v9  ;;  %2367 = vmatpush1.bf16.msra.mxu1 %v2484_v9  ;;  %361 = vst.msk [vmem:[#allocation2 + $0x160] sm:$0xff] %vm316_vm0, %v2807_v19  ;;  %362 = vst.msk [vmem:[#allocation2 + $0x168] sm:$0xff] %vm316_vm0, %v2807_v19  ;;  %v2556_v59 = vld [vmem:[%s3049_s10 + $0x1a4] ss:$8 sps:$4 sm:$0xff]   ;;  %v2558_v60 = vld [vmem:[%s3049_s10 + $0xa0] ss:$8 sps:$4 sm:$0xff]  }
  0xa3   : > { %971 = vmatprep.subr.bf16.mxu0 %v2806_v0  ;;  %2352 = vmatprep.subr.bf16.mxu1 %v2806_v0  ;;  %363 = vst.msk [vmem:[#allocation2 + $0x170] sm:$0xff] %vm316_vm0, %v2807_v19  ;;  %364 = vst.msk [vmem:[#allocation2 + $0x178] sm:$0xff] %vm316_vm0, %v2807_v19  ;;  %v2559_v61 = vld [vmem:[%s3049_s10 + $0x1a0] ss:$8 sps:$4 sm:$0xff]   ;;  %v2560_v62 = vld [vmem:[%s3049_s10 + $0xb4] ss:$8 sps:$4 sm:$0xff]  }
  0xa4   : > { %365 = vst.msk [vmem:[#allocation2 + $0x180] sm:$0xff] %vm316_vm0, %v2807_v19  ;;  %366 = vst.msk [vmem:[#allocation2 + $0x188] sm:$0xff] %vm316_vm0, %v2807_v19  ;;  %v2562_v63 = vld [vmem:[%s3049_s10 + $0x1b4] ss:$8 sps:$4 sm:$0xff]   ;;  %v2565_v1 = vld [vmem:[%s3049_s10 + $0x1b0] ss:$8 sps:$4 sm:$0xff]  }
  0xa5   : > { %367 = vst.msk [vmem:[#allocation2 + $0x190] sm:$0xff] %vm316_vm0, %v2807_v19  ;;  %368 = vst.msk [vmem:[#allocation2 + $0x198] sm:$0xff] %vm316_vm0, %v2807_v19  ;;  %v2566_v2 = vld [vmem:[%s3049_s10 + $0xc4] ss:$8 sps:$4 sm:$0xff]   ;;  %v2570_v4 = vld [vmem:[%s3049_s10 + $0xc0] ss:$8 sps:$4 sm:$0xff]  }
  0xa6   : > { %972 = vmatpush1.bf16.msra.mxu0 %v2485_v10  ;;  %2368 = vmatpush1.bf16.msra.mxu1 %v2485_v10  ;;  %369 = vst.msk [vmem:[#allocation2 + $0x1a0] sm:$0xff] %vm316_vm0, %v2807_v19  ;;  %370 = vst.msk [vmem:[#allocation2 + $0x1a8] sm:$0xff] %vm316_vm0, %v2807_v19  ;;  %v2568_v3 = vld [vmem:[%s3049_s10 + $0x1c4] ss:$8 sps:$4 sm:$0xff]   ;;  %v2571_v5 = vld [vmem:[%s3049_s10 + $0x1c0] ss:$8 sps:$4 sm:$0xff]  }
  0xa7   : > { %973 = vmatprep.subr.bf16.mxu0 %v2806_v0  ;;  %2353 = vmatprep.subr.bf16.mxu1 %v2806_v0  ;;  %371 = vst.msk [vmem:[#allocation2 + $0x1b0] sm:$0xff] %vm316_vm0, %v2807_v19  ;;  %372 = vst.msk [vmem:[#allocation2 + $0x1b8] sm:$0xff] %vm316_vm0, %v2807_v19  ;;  %v2572_v6 = vld [vmem:[%s3049_s10 + $0xd4] ss:$8 sps:$4 sm:$0xff]   ;;  %v2576_v8 = vld [vmem:[%s3049_s10 + $0xd0] ss:$8 sps:$4 sm:$0xff]  }
  0xa8   : > { %373 = vst.msk [vmem:[#allocation2 + $0x1c0] sm:$0xff] %vm316_vm0, %v2807_v19  ;;  %374 = vst.msk [vmem:[#allocation2 + $0x1c8] sm:$0xff] %vm316_vm0, %v2807_v19  ;;  %v2574_v7 = vld [vmem:[%s3049_s10 + $0x1d4] ss:$8 sps:$4 sm:$0xff]   ;;  %v2577_v9 = vld [vmem:[%s3049_s10 + $0x1d0] ss:$8 sps:$4 sm:$0xff]  }
  0xa9   : > { %375 = vst.msk [vmem:[#allocation2 + $0x1d0] sm:$0xff] %vm316_vm0, %v2807_v19  ;;  %376 = vst.msk [vmem:[#allocation2 + $0x1d8] sm:$0xff] %vm316_vm0, %v2807_v19  ;;  %v2578_v10 = vld [vmem:[%s3049_s10 + $0xe4] ss:$8 sps:$4 sm:$0xff]   ;;  %s2712_s21 = scalar_lea.vmem %s2711_s13, 8192 }
  0xaa   : > { %974 = vmatpush1.bf16.msra.mxu0 %v2486_v11  ;;  %2369 = vmatpush1.bf16.msra.mxu1 %v2486_v11  ;;  %377 = vst.msk [vmem:[#allocation2 + $0x1e0] sm:$0xff] %vm316_vm0, %v2807_v19  ;;  %378 = vst.msk [vmem:[#allocation2 + $0x1e8] sm:$0xff] %vm316_vm0, %v2807_v19  ;;  %v2580_v11 = vld [vmem:[%s3049_s10 + $0x1e4] ss:$8 sps:$4 sm:$0xff]   ;;  %p2714_p7 = scmp.lt.s32.totalorder %s2712_s21, %s2706_s7 }
  0xab   : > { %975 = vmatprep.subr.bf16.mxu0 %v2806_v0  ;;  %2354 = vmatprep.subr.bf16.mxu1 %v2806_v0  ;;  %379 = vst.msk [vmem:[#allocation2 + $0x1f0] sm:$0xff] %vm316_vm0, %v2807_v19  ;;  %380 = vst.msk [vmem:[#allocation2 + $0x1f8] sm:$0xff] %vm316_vm0, %v2807_v19  ;;  %v413_v19 = vld [vmem:[#allocation2 + $0x100] sm:$0xff] }
  0xac   : > { %p2715_p9 = por %p2714_p7, %p2713_p5 }
  0xae   : > { %976 = vmatpush1.bf16.msra.mxu0 %v2487_v12  ;;  %2370 = vmatpush1.bf16.msra.mxu1 %v2487_v12  ;;  %v2582_v12 = vld [vmem:[%s3049_s10 + $0xe0] ss:$8 sps:$4 sm:$0xff]   ;;  %p2716_p13 = pnand %p2715_p9, %p2709_p3 }
  0xaf   : > { %977 = vmatprep.subr.bf16.mxu0 %v2806_v0  ;;  %2355 = vmatprep.subr.bf16.mxu1 %v2806_v0 }
  0xb2   : > { %978 = vmatpush1.bf16.msra.mxu0 %v2488_v13  ;;  %2371 = vmatpush1.bf16.msra.mxu1 %v2488_v13  ;;  %v2583_v13 = vld [vmem:[%s3049_s10 + $0x1e0] ss:$8 sps:$4 sm:$0xff]  }
  0xb3   : > { %979 = vmatprep.subr.bf16.mxu0 %v2806_v0  ;;  %2356 = vmatprep.subr.bf16.mxu1 %v2806_v0 }
  0xb6   : > { %980 = vmatpush1.bf16.msra.mxu0 %v2489_v14  ;;  %2372 = vmatpush1.bf16.msra.mxu1 %v2489_v14  ;;  %v2584_v14 = vld [vmem:[%s3049_s10 + $0xf4] ss:$8 sps:$4 sm:$0xff]  }
  0xb7   : > { %981 = vmatprep.subr.bf16.mxu0 %v2806_v0  ;;  %2357 = vmatprep.subr.bf16.mxu1 %v2806_v0 }
  0xba   : > { %982 = vmatpush1.bf16.msra.mxu0 %v2490_v15  ;;  %2373 = vmatpush1.bf16.msra.mxu1 %v2490_v15  ;;  %v2586_v15 = vld [vmem:[%s3049_s10 + $0x1f4] ss:$8 sps:$4 sm:$0xff]  }
  0xbb   : > { %983 = vmatprep.subr.bf16.mxu0 %v2806_v0  ;;  %2358 = vmatprep.subr.bf16.mxu1 %v2806_v0 }
  0xbe   : > { %984 = vmatpush1.bf16.msra.mxu0 %v2491_v16  ;;  %2374 = vmatpush1.bf16.msra.mxu1 %v2491_v16  ;;  %v2588_v16 = vld [vmem:[%s3049_s10 + $0xf0] ss:$8 sps:$4 sm:$0xff]  }
  0xbf   : > { %985 = vmatprep.subr.bf16.mxu0 %v2806_v0  ;;  %2359 = vmatprep.subr.bf16.mxu1 %v2806_v0 }
  0xc2   : > { %986 = vmatpush1.bf16.msra.mxu0 %v2492_v17  ;;  %2375 = vmatpush1.bf16.msra.mxu1 %v2492_v17  ;;  %v2589_v17 = vld [vmem:[%s3049_s10 + $0x1f0] ss:$8 sps:$4 sm:$0xff]  }
  0xc3   : > { %987 = vmatprep.subr.bf16.mxu0 %v2806_v0  ;;  %2360 = vmatprep.subr.bf16.mxu1 %v2806_v0  ;;  %v2564_v0 = vld [vmem:[%s3049_s10 + $0xb0] ss:$8 sps:$4 sm:$0xff]  }
  0xc6   : > { %988 = vmatpush1.bf16.msra.mxu0 %v3095_v18  ;;  %2376 = vmatpush1.bf16.msra.mxu1 %v3095_v18  ;;  %v381_v18 = vld [vmem:[#allocation2] sm:$0xff] }
  0xc9   : > { %990 = vmatmul.mubr.bf16.vlgmr.msra.gmra.mrb[0].mxu0 %v2494_v20  ;;  %1118 = vmatmul.mubr.bf16.vlgmr.msra.gmra.mrb[0].mxu1 %v2497_v21 }
  0xca   : > { %997 = vmatprep.mubr.bf16.mxu0 %v2500_v22  ;;  %1125 = vmatprep.mubr.bf16.mxu1 %v2502_v23  ;;  %v382_v22 = vld [vmem:[#allocation2 + $0x8] sm:$0xff] }
  0xcb   : > { %v414_v23 = vld [vmem:[#allocation2 + $0x108] sm:$0xff] }
  0xd1   : > { %998 = vmatmul.mubr.bf16.gmra.mrb[4].mxu0 %v2504_v24  ;;  %1126 = vmatmul.mubr.bf16.gmra.mrb[4].mxu1 %v2505_v25 }
  0xd2   : > { %1005 = vmatprep.mubr.bf16.mxu0 %v2506_v26  ;;  %1133 = vmatprep.mubr.bf16.mxu1 %v2508_v27 }
  0xd9   : > { %1006 = vmatmul.mubr.bf16.gmra.mrb[8].mxu0 %v2510_v28  ;;  %1134 = vmatmul.mubr.bf16.gmra.mrb[8].mxu1 %v2511_v29 }
  0xda   : > { %1013 = vmatprep.mubr.bf16.mxu0 %v2512_v30  ;;  %1141 = vmatprep.mubr.bf16.mxu1 %v2514_v31 }
  0xe1   : > { %1014 = vmatmul.mubr.bf16.gmra.mrb[12].mxu0 %v2516_v32  ;;  %1142 = vmatmul.mubr.bf16.gmra.mrb[12].mxu1 %v2517_v33 }
  0xe2   : > { %1021 = vmatprep.mubr.bf16.mxu0 %v2518_v34  ;;  %1149 = vmatprep.mubr.bf16.mxu1 %v2520_v35  ;;  %v383_v34 = vld [vmem:[#allocation2 + $0x10] sm:$0xff] }
  0xe3   : > { %v415_v35 = vld [vmem:[#allocation2 + $0x110] sm:$0xff] }
  0xe9   : > { %1022 = vmatmul.mubr.bf16.gmra.mrb[16].mxu0 %v2522_v36  ;;  %1150 = vmatmul.mubr.bf16.gmra.mrb[16].mxu1 %v2523_v37  ;;  %v3295_v36 = vld [vmem:[#allocation8] ss:$0 sm:$0xff] }
  0xea   : > { %1029 = vmatprep.mubr.bf16.mxu0 %v2524_v38  ;;  %1157 = vmatprep.mubr.bf16.mxu1 %v2526_v39  ;;  %v384_v39 = vld [vmem:[#allocation2 + $0x18] sm:$0xff] }
  0xf1   : > { %1030 = vmatmul.mubr.bf16.gmra.mrb[20].mxu0 %v2528_v40  ;;  %1158 = vmatmul.mubr.bf16.gmra.mrb[20].mxu1 %v2529_v41  ;;  %v416_v40 = vld [vmem:[#allocation2 + $0x118] sm:$0xff] }
  0xf2   : > { %1037 = vmatprep.mubr.bf16.mxu0 %v2530_v42  ;;  %1165 = vmatprep.mubr.bf16.mxu1 %v2532_v43 }
  0xf9   : > { %1038 = vmatmul.mubr.bf16.gmra.mrb[24].mxu0 %v2534_v44  ;;  %1166 = vmatmul.mubr.bf16.gmra.mrb[24].mxu1 %v2535_v45 }
  0xfa   : > { %1045 = vmatprep.mubr.bf16.mxu0 %v2536_v46  ;;  %1173 = vmatprep.mubr.bf16.mxu1 %v2538_v47  ;;  %v3297_v46 = vld [vmem:[#allocation9] ss:$0 sm:$0xff] }
 0x101   : > { %1046 = vmatmul.mubr.bf16.gmra.mrb[28].mxu0 %v2540_v48  ;;  %1174 = vmatmul.mubr.bf16.gmra.mrb[28].mxu1 %v2541_v49 }
 0x102   : > { %1053 = vmatprep.mubr.bf16.mxu0 %v2542_v50  ;;  %1181 = vmatprep.mubr.bf16.mxu1 %v2544_v51 }
 0x109   : > { %1054 = vmatmul.mubr.bf16.gmra.mrb[32].mxu0 %v2546_v52  ;;  %1182 = vmatmul.mubr.bf16.gmra.mrb[32].mxu1 %v2547_v53 }
 0x10a   : > { %1061 = vmatprep.mubr.bf16.mxu0 %v2548_v54  ;;  %1189 = vmatprep.mubr.bf16.mxu1 %v2550_v55 }
 0x111   : > { %1062 = vmatmul.mubr.bf16.gmra.mrb[36].mxu0 %v2552_v56  ;;  %1190 = vmatmul.mubr.bf16.gmra.mrb[36].mxu1 %v2553_v57 }
 0x112   : > { %1069 = vmatprep.mubr.bf16.mxu0 %v2554_v58  ;;  %1197 = vmatprep.mubr.bf16.mxu1 %v2556_v59 }
 0x119   : > { %1070 = vmatmul.mubr.bf16.gmra.mrb[40].mxu0 %v2558_v60  ;;  %1198 = vmatmul.mubr.bf16.gmra.mrb[40].mxu1 %v2559_v61 }
 0x11a   : > { %1077 = vmatprep.mubr.bf16.mxu0 %v2560_v62  ;;  %1205 = vmatprep.mubr.bf16.mxu1 %v2562_v63 }
 0x121   : > { %1078 = vmatmul.mubr.bf16.gmra.mrb[44].mxu0 %v2564_v0  ;;  %1206 = vmatmul.mubr.bf16.gmra.mrb[44].mxu1 %v2565_v1 }
 0x122   : > { %1085 = vmatprep.mubr.bf16.mxu0 %v2566_v2  ;;  %1213 = vmatprep.mubr.bf16.mxu1 %v2568_v3  ;;  %v385_v2 = vld [vmem:[#allocation2 + $0x20] sm:$0xff] }
 0x123   : > { %v417_v3 = vld [vmem:[#allocation2 + $0x120] sm:$0xff] }
 0x129   : > { %1086 = vmatmul.mubr.bf16.gmra.mrb[48].mxu0 %v2570_v4  ;;  %1214 = vmatmul.mubr.bf16.gmra.mrb[48].mxu1 %v2571_v5 }
 0x12a   : > { %1093 = vmatprep.mubr.bf16.mxu0 %v2572_v6  ;;  %1221 = vmatprep.mubr.bf16.mxu1 %v2574_v7 }
 0x131   : > { %1094 = vmatmul.mubr.bf16.gmra.mrb[52].mxu0 %v2576_v8  ;;  %1222 = vmatmul.mubr.bf16.gmra.mrb[52].mxu1 %v2577_v9 }
 0x132   : > { %1101 = vmatprep.mubr.bf16.mxu0 %v2578_v10  ;;  %1229 = vmatprep.mubr.bf16.mxu1 %v2580_v11 }
 0x139   : > { %1102 = vmatmul.mubr.bf16.gmra.mrb[56].mxu0 %v2582_v12  ;;  %1230 = vmatmul.mubr.bf16.gmra.mrb[56].mxu1 %v2583_v13  ;;  %v386_v12 = vld [vmem:[#allocation2 + $0x28] sm:$0xff] }
 0x13a   : > { %1109 = vmatprep.mubr.bf16.mxu0 %v2584_v14  ;;  %1237 = vmatprep.mubr.bf16.mxu1 %v2586_v15  ;;  %v418_v13 = vld [vmem:[#allocation2 + $0x128] sm:$0xff] }
 0x141   : > { %1110 = vmatmul.mubr.bf16.gmra.mrb[60].mxu0 %v2588_v16  ;;  %1238 = vmatmul.mubr.bf16.gmra.mrb[60].mxu1 %v2589_v17 }
 0x19c   : > { %v991_v20 = vpop.f32.mrb[0].mxu0  ;;  %v1119_v21 = vpop.f32.mrb[0].mxu1 }
 0x19d   : > { %v1246_v24 = vadd.f32 %v991_v20, %v381_v18  ;;  %v1278_v25 = vadd.f32 %v1119_v21, %v413_v19  ;;  %v993_v26 = vpop.f32.mrb[1].mxu0  ;;  %v1121_v27 = vpop.f32.mrb[1].mxu1 }
 0x19e   : > { %v994_v28 = vpop.f32.mrb[2].mxu0  ;;  %v1122_v29 = vpop.f32.mrb[2].mxu1 }
 0x19f   : > { %1311 = vst.msk [vmem:[#allocation2] sm:$0xff] %vm316_vm0, %v1246_v24  ;;  %1343 = vst.msk [vmem:[#allocation2 + $0x100] sm:$0xff] %vm316_vm0, %v1278_v25  ;;  %v1247_v30 = vadd.f32 %v994_v28, %v382_v22  ;;  %v1279_v31 = vadd.f32 %v1122_v29, %v414_v23  ;;  %v996_v32 = vpop.f32.mrb[3].mxu0  ;;  %v1124_v33 = vpop.f32.mrb[3].mxu1 }
 0x1a1   : > { %1312 = vst.msk [vmem:[#allocation2 + $0x8] sm:$0xff] %vm316_vm0, %v1247_v30  ;;  %1344 = vst.msk [vmem:[#allocation2 + $0x108] sm:$0xff] %vm316_vm0, %v1279_v31 }
 0x1a4   : > { %v999_v37 = vpop.f32.mrb[4].mxu0  ;;  %v1127_v38 = vpop.f32.mrb[4].mxu1 }
 0x1a5   : > { %v1248_v41 = vadd.f32 %v999_v37, %v383_v34  ;;  %v1280_v42 = vadd.f32 %v1127_v38, %v415_v35  ;;  %v1001_v43 = vpop.f32.mrb[5].mxu0  ;;  %v1129_v44 = vpop.f32.mrb[5].mxu1 }
 0x1a6   : > { %v1378_v45 = vld [vmem:[#allocation2] sm:$0xff]  ;;  %v1002_v48 = vpop.f32.mrb[6].mxu0  ;;  %v1130_v49 = vpop.f32.mrb[6].mxu1  ;;  %v388_v43 = vld [vmem:[#allocation2 + $0x38] sm:$0xff] }
 0x1a7   : > { %v1410_v47 = vld [vmem:[#allocation2 + $0x100] sm:$0xff]  ;;  %v1449_v50 = vmul.f32 %v3295_v36, %v1378_v45  ;;  %1313 = vst.msk [vmem:[#allocation2 + $0x10] sm:$0xff] %vm316_vm0, %v1248_v41  ;;  %1345 = vst.msk [vmem:[#allocation2 + $0x110] sm:$0xff] %vm316_vm0, %v1280_v42  ;;  %v1249_v52 = vadd.f32 %v1002_v48, %v384_v39  ;;  %v1281_v53 = vadd.f32 %v1130_v49, %v416_v40  ;;  %v1004_v54 = vpop.f32.mrb[7].mxu0  ;;  %v1132_v55 = vpop.f32.mrb[7].mxu1  ;;  %v387_v39 = vld [vmem:[#allocation2 + $0x30] sm:$0xff] }
 0x1a8   : > { %v1481_v51 = vmul.f32 %v3295_v36, %v1410_v47  ;;  %v1379_v56 = vld [vmem:[#allocation2 + $0x8] sm:$0xff]  ;;  %v419_v40 = vld [vmem:[#allocation2 + $0x130] sm:$0xff]  ;;  %v420_v44 = vld [vmem:[#allocation2 + $0x138] sm:$0xff] }
 0x1a9   : > { %v1411_v57 = vld [vmem:[#allocation2 + $0x108] sm:$0xff]  ;;  %v1520_v58 = vadd.f32 %v3297_v46, %v1449_v50  ;;  %v1450_v60 = vmul.f32 %v3295_v36, %v1379_v56  ;;  %1314 = vst.msk [vmem:[#allocation2 + $0x18] sm:$0xff] %vm316_vm0, %v1249_v52  ;;  %1346 = vst.msk [vmem:[#allocation2 + $0x118] sm:$0xff] %vm316_vm0, %v1281_v53 }
 0x1aa   : > { %v1552_v59 = vadd.f32 %v3297_v46, %v1481_v51  ;;  %v1482_v61 = vmul.f32 %v3295_v36, %v1411_v57 }
 0x1ab   : > { %v1584_v62 = vmax.f32 %v1520_v58, 0.0  ;;  %v1521_v0 = vadd.f32 %v3297_v46, %v1450_v60 }
 0x1ac   : > { %v1616_v63 = vmax.f32 %v1552_v59, 0.0  ;;  %v1553_v1 = vadd.f32 %v3297_v46, %v1482_v61  ;;  %v1007_v4 = vpop.f32.mrb[8].mxu0  ;;  %v1135_v5 = vpop.f32.mrb[8].mxu1 }
 0x1ad   : > { %v2280_v6 = vpack.c.bf16 %v1584_v62, %v1584_v62  ;;  %v1585_v8 = vmax.f32 %v1521_v0, 0.0  ;;  %v1009_v10 = vpop.f32.mrb[9].mxu0  ;;  %v1137_v11 = vpop.f32.mrb[9].mxu1  ;;  %v1250_v16 = vadd.f32 %v1007_v4, %v385_v2  ;;  %v1282_v17 = vadd.f32 %v1135_v5, %v417_v3 }
 0x1ae   : > { %v2312_v7 = vpack.c.bf16 %v1616_v63, %v1616_v63  ;;  %v1617_v9 = vmax.f32 %v1553_v1, 0.0  ;;  %v1380_v14 = vld [vmem:[#allocation2 + $0x10] sm:$0xff]  ;;  %v1010_v18 = vpop.f32.mrb[10].mxu0  ;;  %v1138_v19 = vpop.f32.mrb[10].mxu1 }
 0x1af   : > { %v1412_v15 = vld [vmem:[#allocation2 + $0x110] sm:$0xff]  ;;  %1905 = vst.msk [vmem:[%s3312_s25] sm:$0xf] %vm1904_vm1, %v2280_v6  ;;  %v2281_v20 = vpack.c.bf16 %v1585_v8, %v1585_v8  ;;  %v1451_v22 = vmul.f32 %v3295_v36, %v1380_v14  ;;  %v1012_v24 = vpop.f32.mrb[11].mxu0  ;;  %v1140_v25 = vpop.f32.mrb[11].mxu1  ;;  %v1251_v28 = vadd.f32 %v1010_v18, %v386_v12  ;;  %v1283_v29 = vadd.f32 %v1138_v19, %v418_v13  ;;  %v389_v8 = vld [vmem:[#allocation2 + $0x40] sm:$0xff] }
 0x1b0   : > { %1937 = vst.msk [vmem:[%s3312_s25 + $0x80] sm:$0xf] %vm1904_vm1, %v2312_v7  ;;  %v2313_v21 = vpack.c.bf16 %v1617_v9, %v1617_v9  ;;  %v1483_v23 = vmul.f32 %v3295_v36, %v1412_v15  ;;  %v1381_v26 = vld [vmem:[#allocation2 + $0x18] sm:$0xff]  ;;  %v421_v9 = vld [vmem:[#allocation2 + $0x140] sm:$0xff] }
 0x1b1   : > { %v1413_v27 = vld [vmem:[#allocation2 + $0x118] sm:$0xff]  ;;  %1315 = vst.msk [vmem:[#allocation2 + $0x20] sm:$0xff] %vm316_vm0, %v1250_v16  ;;  %1347 = vst.msk [vmem:[#allocation2 + $0x120] sm:$0xff] %vm316_vm0, %v1282_v17  ;;  %v1522_v30 = vadd.f32 %v3297_v46, %v1451_v22  ;;  %v1452_v32 = vmul.f32 %v3295_v36, %v1381_v26  ;;  %v390_v16 = vld [vmem:[#allocation2 + $0x48] sm:$0xff] }
 0x1b2   : > { %1906 = vst.msk [vmem:[%s3312_s25 + $0x4] sm:$0xf] %vm1904_vm1, %v2281_v20  ;;  %1938 = vst.msk [vmem:[%s3312_s25 + $0x84] sm:$0xf] %vm1904_vm1, %v2313_v21  ;;  %v1554_v31 = vadd.f32 %v3297_v46, %v1483_v23  ;;  %v1484_v33 = vmul.f32 %v3295_v36, %v1413_v27  ;;  %v422_v17 = vld [vmem:[#allocation2 + $0x148] sm:$0xff] }
 0x1b3   : > { %1316 = vst.msk [vmem:[#allocation2 + $0x28] sm:$0xff] %vm316_vm0, %v1251_v28  ;;  %1348 = vst.msk [vmem:[#allocation2 + $0x128] sm:$0xff] %vm316_vm0, %v1283_v29  ;;  %v1586_v34 = vmax.f32 %v1522_v30, 0.0  ;;  %v1523_v37 = vadd.f32 %v3297_v46, %v1452_v32 }
 0x1b4   : > { %v1618_v35 = vmax.f32 %v1554_v31, 0.0  ;;  %v1555_v38 = vadd.f32 %v3297_v46, %v1484_v33  ;;  %v1015_v41 = vpop.f32.mrb[12].mxu0  ;;  %v1143_v42 = vpop.f32.mrb[12].mxu1 }
 0x1b5   : > { %v2282_v45 = vpack.c.bf16 %v1586_v34, %v1586_v34  ;;  %v1587_v48 = vmax.f32 %v1523_v37, 0.0  ;;  %v1017_v50 = vpop.f32.mrb[13].mxu0  ;;  %v1145_v51 = vpop.f32.mrb[13].mxu1  ;;  %v1252_v52 = vadd.f32 %v1015_v41, %v387_v39  ;;  %v1284_v53 = vadd.f32 %v1143_v42, %v419_v40 }
 0x1b6   : > { %v2314_v47 = vpack.c.bf16 %v1618_v35, %v1618_v35  ;;  %v1619_v49 = vmax.f32 %v1555_v38, 0.0  ;;  %v1018_v54 = vpop.f32.mrb[14].mxu0  ;;  %v1146_v55 = vpop.f32.mrb[14].mxu1 }
 0x1b7   : > { %1907 = vst.msk [vmem:[%s3312_s25 + $0x8] sm:$0xf] %vm1904_vm1, %v2282_v45  ;;  %v2283_v56 = vpack.c.bf16 %v1587_v48, %v1587_v48  ;;  %v1253_v60 = vadd.f32 %v1018_v54, %v388_v43  ;;  %v1285_v61 = vadd.f32 %v1146_v55, %v420_v44  ;;  %v1020_v62 = vpop.f32.mrb[15].mxu0  ;;  %v1148_v63 = vpop.f32.mrb[15].mxu1  ;;  %v391_v45 = vld [vmem:[#allocation2 + $0x50] sm:$0xff] }
 0x1b8   : > { %1939 = vst.msk [vmem:[%s3312_s25 + $0x88] sm:$0xf] %vm1904_vm1, %v2314_v47  ;;  %v2315_v57 = vpack.c.bf16 %v1619_v49, %v1619_v49  ;;  %v1382_v58 = vld [vmem:[#allocation2 + $0x20] sm:$0xff]  ;;  %v423_v47 = vld [vmem:[#allocation2 + $0x150] sm:$0xff] }
 0x1b9   : > { %v1414_v59 = vld [vmem:[#allocation2 + $0x120] sm:$0xff]  ;;  %v1453_v0 = vmul.f32 %v3295_v36, %v1382_v58  ;;  %1317 = vst.msk [vmem:[#allocation2 + $0x30] sm:$0xff] %vm316_vm0, %v1252_v52  ;;  %1349 = vst.msk [vmem:[#allocation2 + $0x130] sm:$0xff] %vm316_vm0, %v1284_v53 }
 0x1ba   : > { %v1485_v1 = vmul.f32 %v3295_v36, %v1414_v59  ;;  %1908 = vst.msk [vmem:[%s3312_s25 + $0xc] sm:$0xf] %vm1904_vm1, %v2283_v56  ;;  %1940 = vst.msk [vmem:[%s3312_s25 + $0x8c] sm:$0xf] %vm1904_vm1, %v2315_v57  ;;  %v1383_v2 = vld [vmem:[#allocation2 + $0x28] sm:$0xff] }
 0x1bb   : > { %v1415_v3 = vld [vmem:[#allocation2 + $0x128] sm:$0xff]  ;;  %1318 = vst.msk [vmem:[#allocation2 + $0x38] sm:$0xff] %vm316_vm0, %v1253_v60  ;;  %1350 = vst.msk [vmem:[#allocation2 + $0x138] sm:$0xff] %vm316_vm0, %v1285_v61  ;;  %v1524_v4 = vadd.f32 %v3297_v46, %v1453_v0  ;;  %v1454_v6 = vmul.f32 %v3295_v36, %v1383_v2  ;;  %v392_v60 = vld [vmem:[#allocation2 + $0x58] sm:$0xff] }
 0x1bc   : > { %v1556_v5 = vadd.f32 %v3297_v46, %v1485_v1  ;;  %v1486_v7 = vmul.f32 %v3295_v36, %v1415_v3  ;;  %v1023_v14 = vpop.f32.mrb[16].mxu0  ;;  %v1151_v15 = vpop.f32.mrb[16].mxu1  ;;  %v424_v61 = vld [vmem:[#allocation2 + $0x158] sm:$0xff] }
 0x1bd   : > { %v1588_v10 = vmax.f32 %v1524_v4, 0.0  ;;  %v1525_v12 = vadd.f32 %v3297_v46, %v1454_v6  ;;  %v1254_v18 = vadd.f32 %v1023_v14, %v389_v8  ;;  %v1286_v19 = vadd.f32 %v1151_v15, %v421_v9  ;;  %v1025_v20 = vpop.f32.mrb[17].mxu0  ;;  %v1153_v21 = vpop.f32.mrb[17].mxu1 }
 0x1be   : > { %v1620_v11 = vmax.f32 %v1556_v5, 0.0  ;;  %v1557_v13 = vadd.f32 %v3297_v46, %v1486_v7  ;;  %v1026_v26 = vpop.f32.mrb[18].mxu0  ;;  %v1154_v27 = vpop.f32.mrb[18].mxu1 }
 0x1bf   : > { %v2284_v22 = vpack.c.bf16 %v1588_v10, %v1588_v10  ;;  %v1589_v24 = vmax.f32 %v1525_v12, 0.0  ;;  %1319 = vst.msk [vmem:[#allocation2 + $0x40] sm:$0xff] %vm316_vm0, %v1254_v18  ;;  %1351 = vst.msk [vmem:[#allocation2 + $0x140] sm:$0xff] %vm316_vm0, %v1286_v19  ;;  %v1255_v30 = vadd.f32 %v1026_v26, %v390_v16  ;;  %v1287_v31 = vadd.f32 %v1154_v27, %v422_v17  ;;  %v1028_v32 = vpop.f32.mrb[19].mxu0  ;;  %v1156_v33 = vpop.f32.mrb[19].mxu1 }
 0x1c0   : > { %v2316_v23 = vpack.c.bf16 %v1620_v11, %v1620_v11  ;;  %v1621_v25 = vmax.f32 %v1557_v13, 0.0  ;;  %v1384_v28 = vld [vmem:[#allocation2 + $0x30] sm:$0xff]  ;;  %v394_v32 = vld [vmem:[#allocation2 + $0x68] sm:$0xff] }
 0x1c1   : > { %v1416_v29 = vld [vmem:[#allocation2 + $0x130] sm:$0xff]  ;;  %1909 = vst.msk [vmem:[%s3312_s25 + $0x10] sm:$0xf] %vm1904_vm1, %v2284_v22  ;;  %v2285_v34 = vpack.c.bf16 %v1589_v24, %v1589_v24  ;;  %v1455_v37 = vmul.f32 %v3295_v36, %v1384_v28  ;;  %v393_v22 = vld [vmem:[#allocation2 + $0x60] sm:$0xff]  ;;  %v426_v33 = vld [vmem:[#allocation2 + $0x168] sm:$0xff] }
 0x1c2   : > { %1941 = vst.msk [vmem:[%s3312_s25 + $0x90] sm:$0xf] %vm1904_vm1, %v2316_v23  ;;  %v2317_v35 = vpack.c.bf16 %v1621_v25, %v1621_v25  ;;  %v1487_v38 = vmul.f32 %v3295_v36, %v1416_v29  ;;  %v1385_v39 = vld [vmem:[#allocation2 + $0x38] sm:$0xff]  ;;  %v425_v23 = vld [vmem:[#allocation2 + $0x160] sm:$0xff] }
 0x1c3   : > { %v1417_v40 = vld [vmem:[#allocation2 + $0x138] sm:$0xff]  ;;  %v1456_v41 = vmul.f32 %v3295_v36, %v1385_v39  ;;  %1320 = vst.msk [vmem:[#allocation2 + $0x48] sm:$0xff] %vm316_vm0, %v1255_v30  ;;  %1352 = vst.msk [vmem:[#allocation2 + $0x148] sm:$0xff] %vm316_vm0, %v1287_v31  ;;  %v1526_v43 = vadd.f32 %v3297_v46, %v1455_v37 }
 0x1c4   : > { %v1488_v42 = vmul.f32 %v3295_v36, %v1417_v40  ;;  %1910 = vst.msk [vmem:[%s3312_s25 + $0x14] sm:$0xf] %vm1904_vm1, %v2285_v34  ;;  %1942 = vst.msk [vmem:[%s3312_s25 + $0x94] sm:$0xf] %vm1904_vm1, %v2317_v35  ;;  %v1558_v44 = vadd.f32 %v3297_v46, %v1487_v38  ;;  %v1031_v52 = vpop.f32.mrb[20].mxu0  ;;  %v1159_v53 = vpop.f32.mrb[20].mxu1 }
 0x1c5   : > { %v1527_v48 = vadd.f32 %v3297_v46, %v1456_v41  ;;  %v1590_v50 = vmax.f32 %v1526_v43, 0.0  ;;  %v1256_v56 = vadd.f32 %v1031_v52, %v391_v45  ;;  %v1288_v57 = vadd.f32 %v1159_v53, %v423_v47  ;;  %v1033_v58 = vpop.f32.mrb[21].mxu0  ;;  %v1161_v59 = vpop.f32.mrb[21].mxu1 }
 0x1c6   : > { %v1559_v49 = vadd.f32 %v3297_v46, %v1488_v42  ;;  %v1622_v51 = vmax.f32 %v1558_v44, 0.0  ;;  %v1386_v0 = vld [vmem:[#allocation2 + $0x40] sm:$0xff]  ;;  %v1034_v2 = vpop.f32.mrb[22].mxu0  ;;  %v1162_v3 = vpop.f32.mrb[22].mxu1 }
 0x1c7   : > { %v1591_v54 = vmax.f32 %v1527_v48, 0.0  ;;  %v2286_v62 = vpack.c.bf16 %v1590_v50, %v1590_v50  ;;  %v1418_v1 = vld [vmem:[#allocation2 + $0x140] sm:$0xff]  ;;  %v1457_v6 = vmul.f32 %v3295_v36, %v1386_v0  ;;  %1321 = vst.msk [vmem:[#allocation2 + $0x50] sm:$0xff] %vm316_vm0, %v1256_v56  ;;  %1353 = vst.msk [vmem:[#allocation2 + $0x150] sm:$0xff] %vm316_vm0, %v1288_v57  ;;  %v1036_v8 = vpop.f32.mrb[23].mxu0  ;;  %v1164_v9 = vpop.f32.mrb[23].mxu1  ;;  %v1257_v12 = vadd.f32 %v1034_v2, %v392_v60 }
 0x1c8   : > { %v1623_v55 = vmax.f32 %v1559_v49, 0.0  ;;  %v2318_v63 = vpack.c.bf16 %v1622_v51, %v1622_v51  ;;  %v1489_v7 = vmul.f32 %v3295_v36, %v1418_v1  ;;  %v1289_v13 = vadd.f32 %v1162_v3, %v424_v61  ;;  %v395_v56 = vld [vmem:[#allocation2 + $0x70] sm:$0xff]  ;;  %v396_v0 = vld [vmem:[#allocation2 + $0x78] sm:$0xff] }
 0x1c9   : > { %v2287_v4 = vpack.c.bf16 %v1591_v54, %v1591_v54  ;;  %1911 = vst.msk [vmem:[%s3312_s25 + $0x18] sm:$0xf] %vm1904_vm1, %v2286_v62  ;;  %v1528_v14 = vadd.f32 %v3297_v46, %v1457_v6  ;;  %v427_v57 = vld [vmem:[#allocation2 + $0x170] sm:$0xff]  ;;  %v428_v1 = vld [vmem:[#allocation2 + $0x178] sm:$0xff] }
 0x1ca   : > { %v2319_v5 = vpack.c.bf16 %v1623_v55, %v1623_v55  ;;  %1943 = vst.msk [vmem:[%s3312_s25 + $0x98] sm:$0xf] %vm1904_vm1, %v2318_v63  ;;  %v1387_v10 = vld [vmem:[#allocation2 + $0x48] sm:$0xff]  ;;  %v1560_v15 = vadd.f32 %v3297_v46, %v1489_v7 }
 0x1cb   : > { %v1419_v11 = vld [vmem:[#allocation2 + $0x148] sm:$0xff]  ;;  %1912 = vst.msk [vmem:[%s3312_s25 + $0x1c] sm:$0xf] %vm1904_vm1, %v2287_v4  ;;  %v1458_v16 = vmul.f32 %v3295_v36, %v1387_v10  ;;  %v1592_v18 = vmax.f32 %v1528_v14, 0.0 }
 0x1cc   : > { %1944 = vst.msk [vmem:[%s3312_s25 + $0x9c] sm:$0xf] %vm1904_vm1, %v2319_v5  ;;  %v1490_v17 = vmul.f32 %v3295_v36, %v1419_v11  ;;  %v1624_v19 = vmax.f32 %v1560_v15, 0.0  ;;  %v1039_v24 = vpop.f32.mrb[24].mxu0  ;;  %v1167_v25 = vpop.f32.mrb[24].mxu1 }
 0x1cd   : > { %1322 = vst.msk [vmem:[#allocation2 + $0x58] sm:$0xff] %vm316_vm0, %v1257_v12  ;;  %1354 = vst.msk [vmem:[#allocation2 + $0x158] sm:$0xff] %vm316_vm0, %v1289_v13  ;;  %v1529_v20 = vadd.f32 %v3297_v46, %v1458_v16  ;;  %v2288_v26 = vpack.c.bf16 %v1592_v18, %v1592_v18  ;;  %v1041_v30 = vpop.f32.mrb[25].mxu0  ;;  %v1169_v31 = vpop.f32.mrb[25].mxu1  ;;  %v1258_v37 = vadd.f32 %v1039_v24, %v393_v22 }
 0x1ce   : > { %v1561_v21 = vadd.f32 %v3297_v46, %v1490_v17  ;;  %v2320_v27 = vpack.c.bf16 %v1624_v19, %v1624_v19  ;;  %v1388_v34 = vld [vmem:[#allocation2 + $0x50] sm:$0xff]  ;;  %v1290_v38 = vadd.f32 %v1167_v25, %v425_v23  ;;  %v1042_v39 = vpop.f32.mrb[26].mxu0  ;;  %v1170_v40 = vpop.f32.mrb[26].mxu1 }
 0x1cf   : > { %v1593_v28 = vmax.f32 %v1529_v20, 0.0  ;;  %v1420_v35 = vld [vmem:[#allocation2 + $0x150] sm:$0xff]  ;;  %1913 = vst.msk [vmem:[%s3312_s25 + $0x20] sm:$0xf] %vm1904_vm1, %v2288_v26  ;;  %v1459_v43 = vmul.f32 %v3295_v36, %v1388_v34  ;;  %v1044_v45 = vpop.f32.mrb[27].mxu0  ;;  %v1172_v47 = vpop.f32.mrb[27].mxu1  ;;  %v1259_v48 = vadd.f32 %v1042_v39, %v394_v32  ;;  %v1291_v49 = vadd.f32 %v1170_v40, %v426_v33 }
 0x1d0   : > { %v1625_v29 = vmax.f32 %v1561_v21, 0.0  ;;  %1945 = vst.msk [vmem:[%s3312_s25 + $0xa0] sm:$0xf] %vm1904_vm1, %v2320_v27  ;;  %v1491_v44 = vmul.f32 %v3295_v36, %v1420_v35 }
 0x1d1   : > { %v2289_v41 = vpack.c.bf16 %v1593_v28, %v1593_v28  ;;  %1323 = vst.msk [vmem:[#allocation2 + $0x60] sm:$0xff] %vm316_vm0, %v1258_v37  ;;  %1355 = vst.msk [vmem:[#allocation2 + $0x160] sm:$0xff] %vm316_vm0, %v1290_v38  ;;  %v1530_v50 = vadd.f32 %v3297_v46, %v1459_v43  ;;  %v397_v28 = vld [vmem:[#allocation2 + $0x80] sm:$0xff]  ;;  %v398_v37 = vld [vmem:[#allocation2 + $0x88] sm:$0xff] }
 0x1d2   : > { %v2321_v42 = vpack.c.bf16 %v1625_v29, %v1625_v29  ;;  %v1562_v51 = vadd.f32 %v3297_v46, %v1491_v44  ;;  %1324 = vst.msk [vmem:[#allocation2 + $0x68] sm:$0xff] %vm316_vm0, %v1259_v48  ;;  %1356 = vst.msk [vmem:[#allocation2 + $0x168] sm:$0xff] %vm316_vm0, %v1291_v49  ;;  %v429_v29 = vld [vmem:[#allocation2 + $0x180] sm:$0xff]  ;;  %v430_v38 = vld [vmem:[#allocation2 + $0x188] sm:$0xff] }
 0x1d3   : > { %1914 = vst.msk [vmem:[%s3312_s25 + $0x24] sm:$0xf] %vm1904_vm1, %v2289_v41  ;;  %v1594_v58 = vmax.f32 %v1530_v50, 0.0 }
 0x1d4   : > { %1946 = vst.msk [vmem:[%s3312_s25 + $0xa4] sm:$0xf] %vm1904_vm1, %v2321_v42  ;;  %v1389_v52 = vld [vmem:[#allocation2 + $0x58] sm:$0xff]  ;;  %v1626_v59 = vmax.f32 %v1562_v51, 0.0  ;;  %v1047_v62 = vpop.f32.mrb[28].mxu0  ;;  %v1175_v63 = vpop.f32.mrb[28].mxu1 }
 0x1d5   : > { %v1421_v53 = vld [vmem:[#allocation2 + $0x158] sm:$0xff]  ;;  %v1460_v54 = vmul.f32 %v3295_v36, %v1389_v52  ;;  %v2290_v2 = vpack.c.bf16 %v1594_v58, %v1594_v58  ;;  %v1260_v4 = vadd.f32 %v1047_v62, %v395_v56  ;;  %v1292_v5 = vadd.f32 %v1175_v63, %v427_v57  ;;  %v1049_v6 = vpop.f32.mrb[29].mxu0  ;;  %v1177_v7 = vpop.f32.mrb[29].mxu1 }
 0x1d6   : > { %v1492_v55 = vmul.f32 %v3295_v36, %v1421_v53  ;;  %v2322_v3 = vpack.c.bf16 %v1626_v59, %v1626_v59  ;;  %v1050_v10 = vpop.f32.mrb[30].mxu0  ;;  %v1178_v11 = vpop.f32.mrb[30].mxu1  ;;  %v399_v6 = vld [vmem:[#allocation2 + $0x90] sm:$0xff] }
 0x1d7   : > { %v1531_v60 = vadd.f32 %v3297_v46, %v1460_v54  ;;  %1915 = vst.msk [vmem:[%s3312_s25 + $0x28] sm:$0xf] %vm1904_vm1, %v2290_v2  ;;  %v1261_v14 = vadd.f32 %v1050_v10, %v396_v0  ;;  %v1293_v15 = vadd.f32 %v1178_v11, %v428_v1  ;;  %v1052_v16 = vpop.f32.mrb[31].mxu0  ;;  %v1180_v17 = vpop.f32.mrb[31].mxu1  ;;  %v431_v7 = vld [vmem:[#allocation2 + $0x190] sm:$0xff] }
 0x1d8   : > { %v1563_v61 = vadd.f32 %v3297_v46, %v1492_v55  ;;  %1947 = vst.msk [vmem:[%s3312_s25 + $0xa8] sm:$0xf] %vm1904_vm1, %v2322_v3  ;;  %v1390_v12 = vld [vmem:[#allocation2 + $0x60] sm:$0xff]  ;;  %v400_v16 = vld [vmem:[#allocation2 + $0x98] sm:$0xff] }
 0x1d9   : > { %v1595_v8 = vmax.f32 %v1531_v60, 0.0  ;;  %v1422_v13 = vld [vmem:[#allocation2 + $0x160] sm:$0xff]  ;;  %1325 = vst.msk [vmem:[#allocation2 + $0x70] sm:$0xff] %vm316_vm0, %v1260_v4  ;;  %1357 = vst.msk [vmem:[#allocation2 + $0x170] sm:$0xff] %vm316_vm0, %v1292_v5  ;;  %v1461_v20 = vmul.f32 %v3295_v36, %v1390_v12  ;;  %v1391_v22 = vld [vmem:[#allocation2 + $0x68] sm:$0xff] }
 0x1da   : > { %v1627_v9 = vmax.f32 %v1563_v61, 0.0  ;;  %v1493_v21 = vmul.f32 %v3295_v36, %v1422_v13  ;;  %v1423_v23 = vld [vmem:[#allocation2 + $0x168] sm:$0xff]  ;;  %1326 = vst.msk [vmem:[#allocation2 + $0x78] sm:$0xff] %vm316_vm0, %v1261_v14  ;;  %1358 = vst.msk [vmem:[#allocation2 + $0x178] sm:$0xff] %vm316_vm0, %v1293_v15  ;;  %v1462_v26 = vmul.f32 %v3295_v36, %v1391_v22  ;;  %v432_v17 = vld [vmem:[#allocation2 + $0x198] sm:$0xff] }
 0x1db   : > { %v2291_v18 = vpack.c.bf16 %v1595_v8, %v1595_v8  ;;  %v1532_v24 = vadd.f32 %v3297_v46, %v1461_v20  ;;  %v1494_v27 = vmul.f32 %v3295_v36, %v1423_v23 }
 0x1dc   : > { %v2323_v19 = vpack.c.bf16 %v1627_v9, %v1627_v9  ;;  %v1564_v25 = vadd.f32 %v3297_v46, %v1493_v21  ;;  %v1533_v32 = vadd.f32 %v3297_v46, %v1462_v26  ;;  %v1055_v34 = vpop.f32.mrb[32].mxu0  ;;  %v1183_v35 = vpop.f32.mrb[32].mxu1 }
 0x1dd   : > { %1916 = vst.msk [vmem:[%s3312_s25 + $0x2c] sm:$0xf] %vm1904_vm1, %v2291_v18  ;;  %v1596_v30 = vmax.f32 %v1532_v24, 0.0  ;;  %v1565_v33 = vadd.f32 %v3297_v46, %v1494_v27  ;;  %v1262_v39 = vadd.f32 %v1055_v34, %v397_v28  ;;  %v1294_v40 = vadd.f32 %v1183_v35, %v429_v29  ;;  %v1057_v41 = vpop.f32.mrb[33].mxu0  ;;  %v1185_v42 = vpop.f32.mrb[33].mxu1 }
 0x1de   : > { %1948 = vst.msk [vmem:[%s3312_s25 + $0xac] sm:$0xf] %vm1904_vm1, %v2323_v19  ;;  %v1628_v31 = vmax.f32 %v1564_v25, 0.0  ;;  %v1597_v45 = vmax.f32 %v1533_v32, 0.0  ;;  %v1058_v50 = vpop.f32.mrb[34].mxu0  ;;  %v1186_v51 = vpop.f32.mrb[34].mxu1 }
 0x1df   : > { %v2292_v43 = vpack.c.bf16 %v1596_v30, %v1596_v30  ;;  %v1629_v47 = vmax.f32 %v1565_v33, 0.0  ;;  %1327 = vst.msk [vmem:[#allocation2 + $0x80] sm:$0xff] %vm316_vm0, %v1262_v39  ;;  %1359 = vst.msk [vmem:[#allocation2 + $0x180] sm:$0xff] %vm316_vm0, %v1294_v40  ;;  %v1263_v54 = vadd.f32 %v1058_v50, %v398_v37  ;;  %v1295_v55 = vadd.f32 %v1186_v51, %v430_v38  ;;  %v1060_v56 = vpop.f32.mrb[35].mxu0  ;;  %v1188_v57 = vpop.f32.mrb[35].mxu1 }
 0x1e0   : > { %v2324_v44 = vpack.c.bf16 %v1628_v31, %v1628_v31  ;;  %v1392_v48 = vld [vmem:[#allocation2 + $0x70] sm:$0xff]  ;;  %v2293_v58 = vpack.c.bf16 %v1597_v45, %v1597_v45 }
 0x1e1   : > { %v1424_v49 = vld [vmem:[#allocation2 + $0x170] sm:$0xff]  ;;  %v1463_v52 = vmul.f32 %v3295_v36, %v1392_v48  ;;  %1917 = vst.msk [vmem:[%s3312_s25 + $0x30] sm:$0xf] %vm1904_vm1, %v2292_v43  ;;  %v2325_v59 = vpack.c.bf16 %v1629_v47, %v1629_v47  ;;  %v1393_v60 = vld [vmem:[#allocation2 + $0x78] sm:$0xff]  ;;  %v401_v43 = vld [vmem:[#allocation2 + $0xa0] sm:$0xff] }
 0x1e2   : > { %v1495_v53 = vmul.f32 %v3295_v36, %v1424_v49  ;;  %1949 = vst.msk [vmem:[%s3312_s25 + $0xb0] sm:$0xf] %vm1904_vm1, %v2324_v44  ;;  %v1425_v61 = vld [vmem:[#allocation2 + $0x178] sm:$0xff]  ;;  %v1464_v0 = vmul.f32 %v3295_v36, %v1393_v60  ;;  %1918 = vst.msk [vmem:[%s3312_s25 + $0x34] sm:$0xf] %vm1904_vm1, %v2293_v58  ;;  %v433_v44 = vld [vmem:[#allocation2 + $0x1a0] sm:$0xff] }
 0x1e3   : > { %v1534_v62 = vadd.f32 %v3297_v46, %v1463_v52  ;;  %v1496_v1 = vmul.f32 %v3295_v36, %v1425_v61  ;;  %1328 = vst.msk [vmem:[#allocation2 + $0x88] sm:$0xff] %vm316_vm0, %v1263_v54  ;;  %1360 = vst.msk [vmem:[#allocation2 + $0x188] sm:$0xff] %vm316_vm0, %v1295_v55  ;;  %v402_v48 = vld [vmem:[#allocation2 + $0xa8] sm:$0xff] }
 0x1e4   : > { %v1566_v63 = vadd.f32 %v3297_v46, %v1495_v53  ;;  %1950 = vst.msk [vmem:[%s3312_s25 + $0xb4] sm:$0xf] %vm1904_vm1, %v2325_v59  ;;  %v1535_v4 = vadd.f32 %v3297_v46, %v1464_v0  ;;  %v1063_v8 = vpop.f32.mrb[36].mxu0  ;;  %v1191_v9 = vpop.f32.mrb[36].mxu1  ;;  %v434_v49 = vld [vmem:[#allocation2 + $0x1a8] sm:$0xff] }
 0x1e5   : > { %v1598_v2 = vmax.f32 %v1534_v62, 0.0  ;;  %v1567_v5 = vadd.f32 %v3297_v46, %v1496_v1  ;;  %v1065_v14 = vpop.f32.mrb[37].mxu0  ;;  %v1193_v15 = vpop.f32.mrb[37].mxu1  ;;  %v1264_v20 = vadd.f32 %v1063_v8, %v399_v6  ;;  %v1296_v21 = vadd.f32 %v1191_v9, %v431_v7 }
 0x1e6   : > { %v1630_v3 = vmax.f32 %v1566_v63, 0.0  ;;  %v1599_v12 = vmax.f32 %v1535_v4, 0.0  ;;  %v1394_v18 = vld [vmem:[#allocation2 + $0x80] sm:$0xff]  ;;  %v1066_v22 = vpop.f32.mrb[38].mxu0  ;;  %v1194_v23 = vpop.f32.mrb[38].mxu1 }
 0x1e7   : > { %v2294_v10 = vpack.c.bf16 %v1598_v2, %v1598_v2  ;;  %v1631_v13 = vmax.f32 %v1567_v5, 0.0  ;;  %v1426_v19 = vld [vmem:[#allocation2 + $0x180] sm:$0xff]  ;;  %v1465_v26 = vmul.f32 %v3295_v36, %v1394_v18  ;;  %v1068_v28 = vpop.f32.mrb[39].mxu0  ;;  %v1196_v29 = vpop.f32.mrb[39].mxu1  ;;  %1329 = vst.msk [vmem:[#allocation2 + $0x90] sm:$0xff] %vm316_vm0, %v1264_v20  ;;  %1361 = vst.msk [vmem:[#allocation2 + $0x190] sm:$0xff] %vm316_vm0, %v1296_v21  ;;  %v1265_v32 = vadd.f32 %v1066_v22, %v400_v16 }
 0x1e8   : > { %v2326_v11 = vpack.c.bf16 %v1630_v3, %v1630_v3  ;;  %v2295_v24 = vpack.c.bf16 %v1599_v12, %v1599_v12  ;;  %v1497_v27 = vmul.f32 %v3295_v36, %v1426_v19  ;;  %v1297_v33 = vadd.f32 %v1194_v23, %v432_v17  ;;  %v403_v12 = vld [vmem:[#allocation2 + $0xb0] sm:$0xff]  ;;  %v404_v20 = vld [vmem:[#allocation2 + $0xb8] sm:$0xff] }
 0x1e9   : > { %1919 = vst.msk [vmem:[%s3312_s25 + $0x38] sm:$0xf] %vm1904_vm1, %v2294_v10  ;;  %v2327_v25 = vpack.c.bf16 %v1631_v13, %v1631_v13  ;;  %v1536_v34 = vadd.f32 %v3297_v46, %v1465_v26  ;;  %v435_v13 = vld [vmem:[#allocation2 + $0x1b0] sm:$0xff]  ;;  %v436_v21 = vld [vmem:[#allocation2 + $0x1b8] sm:$0xff] }
 0x1ea   : > { %1951 = vst.msk [vmem:[%s3312_s25 + $0xb8] sm:$0xf] %vm1904_vm1, %v2326_v11  ;;  %v1395_v30 = vld [vmem:[#allocation2 + $0x88] sm:$0xff]  ;;  %1920 = vst.msk [vmem:[%s3312_s25 + $0x3c] sm:$0xf] %vm1904_vm1, %v2295_v24  ;;  %v1568_v35 = vadd.f32 %v3297_v46, %v1497_v27 }
 0x1eb   : > { %v1427_v31 = vld [vmem:[#allocation2 + $0x188] sm:$0xff]  ;;  %1952 = vst.msk [vmem:[%s3312_s25 + $0xbc] sm:$0xf] %vm1904_vm1, %v2327_v25  ;;  %v1466_v37 = vmul.f32 %v3295_v36, %v1395_v30  ;;  %v1600_v39 = vmax.f32 %v1536_v34, 0.0 }
 0x1ec   : > { %v1498_v38 = vmul.f32 %v3295_v36, %v1427_v31  ;;  %1330 = vst.msk [vmem:[#allocation2 + $0x98] sm:$0xff] %vm316_vm0, %v1265_v32  ;;  %1362 = vst.msk [vmem:[#allocation2 + $0x198] sm:$0xff] %vm316_vm0, %v1297_v33  ;;  %v1632_v40 = vmax.f32 %v1568_v35, 0.0  ;;  %v1071_v45 = vpop.f32.mrb[40].mxu0  ;;  %v1199_v47 = vpop.f32.mrb[40].mxu1 }
 0x1ed   : > { %v1537_v41 = vadd.f32 %v3297_v46, %v1466_v37  ;;  %v2296_v50 = vpack.c.bf16 %v1600_v39, %v1600_v39  ;;  %v1073_v54 = vpop.f32.mrb[41].mxu0  ;;  %v1201_v55 = vpop.f32.mrb[41].mxu1  ;;  %v1266_v56 = vadd.f32 %v1071_v45, %v401_v43  ;;  %v1298_v57 = vadd.f32 %v1199_v47, %v433_v44 }
 0x1ee   : > { %v1569_v42 = vadd.f32 %v3297_v46, %v1498_v38  ;;  %v2328_v51 = vpack.c.bf16 %v1632_v40, %v1632_v40  ;;  %v1074_v58 = vpop.f32.mrb[42].mxu0  ;;  %v1202_v59 = vpop.f32.mrb[42].mxu1  ;;  %v1396_v62 = vld [vmem:[#allocation2 + $0x90] sm:$0xff] }
 0x1ef   : > { %v1601_v52 = vmax.f32 %v1537_v41, 0.0  ;;  %1921 = vst.msk [vmem:[%s3312_s25 + $0x40] sm:$0xf] %vm1904_vm1, %v2296_v50  ;;  %v1428_v63 = vld [vmem:[#allocation2 + $0x190] sm:$0xff]  ;;  %v1267_v0 = vadd.f32 %v1074_v58, %v402_v48  ;;  %v1299_v1 = vadd.f32 %v1202_v59, %v434_v49  ;;  %v1076_v2 = vpop.f32.mrb[43].mxu0  ;;  %v1204_v3 = vpop.f32.mrb[43].mxu1  ;;  %v1467_v4 = vmul.f32 %v3295_v36, %v1396_v62 }
 0x1f0   : > { %v1633_v53 = vmax.f32 %v1569_v42, 0.0  ;;  %1953 = vst.msk [vmem:[%s3312_s25 + $0xc0] sm:$0xf] %vm1904_vm1, %v2328_v51  ;;  %v1499_v5 = vmul.f32 %v3295_v36, %v1428_v63  ;;  %v405_v50 = vld [vmem:[#allocation2 + $0xc0] sm:$0xff] }
 0x1f1   : > { %v2297_v60 = vpack.c.bf16 %v1601_v52, %v1601_v52  ;;  %1331 = vst.msk [vmem:[#allocation2 + $0xa0] sm:$0xff] %vm316_vm0, %v1266_v56  ;;  %1363 = vst.msk [vmem:[#allocation2 + $0x1a0] sm:$0xff] %vm316_vm0, %v1298_v57  ;;  %v1538_v8 = vadd.f32 %v3297_v46, %v1467_v4  ;;  %v437_v51 = vld [vmem:[#allocation2 + $0x1c0] sm:$0xff] }
 0x1f2   : > { %v2329_v61 = vpack.c.bf16 %v1633_v53, %v1633_v53  ;;  %1332 = vst.msk [vmem:[#allocation2 + $0xa8] sm:$0xff] %vm316_vm0, %v1267_v0  ;;  %1364 = vst.msk [vmem:[#allocation2 + $0x1a8] sm:$0xff] %vm316_vm0, %v1299_v1  ;;  %v1570_v9 = vadd.f32 %v3297_v46, %v1499_v5  ;;  %v406_v0 = vld [vmem:[#allocation2 + $0xc8] sm:$0xff] }
 0x1f3   : > { %1922 = vst.msk [vmem:[%s3312_s25 + $0x44] sm:$0xf] %vm1904_vm1, %v2297_v60  ;;  %v1397_v6 = vld [vmem:[#allocation2 + $0x98] sm:$0xff]  ;;  %v1602_v14 = vmax.f32 %v1538_v8, 0.0  ;;  %v438_v1 = vld [vmem:[#allocation2 + $0x1c8] sm:$0xff] }
 0x1f4   : > { %1954 = vst.msk [vmem:[%s3312_s25 + $0xc4] sm:$0xf] %vm1904_vm1, %v2329_v61  ;;  %v1429_v7 = vld [vmem:[#allocation2 + $0x198] sm:$0xff]  ;;  %v1468_v10 = vmul.f32 %v3295_v36, %v1397_v6  ;;  %v1634_v15 = vmax.f32 %v1570_v9, 0.0  ;;  %v1079_v18 = vpop.f32.mrb[44].mxu0  ;;  %v1207_v19 = vpop.f32.mrb[44].mxu1 }
 0x1f5   : > { %v1500_v11 = vmul.f32 %v3295_v36, %v1429_v7  ;;  %v1268_v22 = vadd.f32 %v1079_v18, %v403_v12  ;;  %v1300_v23 = vadd.f32 %v1207_v19, %v435_v13  ;;  %v1081_v24 = vpop.f32.mrb[45].mxu0  ;;  %v1209_v25 = vpop.f32.mrb[45].mxu1  ;;  %v2298_v26 = vpack.c.bf16 %v1602_v14, %v1602_v14  ;;  %v3528_v19 = vld [vmem:[#allocation8] ss:$0 sm:$0xff] }
 0x1f6   : > { %v1539_v16 = vadd.f32 %v3297_v46, %v1468_v10  ;;  %v2330_v27 = vpack.c.bf16 %v1634_v15, %v1634_v15  ;;  %v1082_v30 = vpop.f32.mrb[46].mxu0  ;;  %v1210_v31 = vpop.f32.mrb[46].mxu1 }
 0x1f7   : > { %v1571_v17 = vadd.f32 %v3297_v46, %v1500_v11  ;;  %1333 = vst.msk [vmem:[#allocation2 + $0xb0] sm:$0xff] %vm316_vm0, %v1268_v22  ;;  %1365 = vst.msk [vmem:[#allocation2 + $0x1b0] sm:$0xff] %vm316_vm0, %v1300_v23  ;;  %v1269_v34 = vadd.f32 %v1082_v30, %v404_v20  ;;  %v1301_v35 = vadd.f32 %v1210_v31, %v436_v21  ;;  %v1084_v37 = vpop.f32.mrb[47].mxu0  ;;  %v1212_v38 = vpop.f32.mrb[47].mxu1 }
 0x1f8   : > { %v1603_v28 = vmax.f32 %v1539_v16, 0.0  ;;  %v1398_v32 = vld [vmem:[#allocation2 + $0xa0] sm:$0xff]  ;;  %1923 = vst.msk [vmem:[%s3312_s25 + $0x48] sm:$0xf] %vm1904_vm1, %v2298_v26  ;;  %1955 = vst.msk [vmem:[%s3312_s25 + $0xc8] sm:$0xf] %vm1904_vm1, %v2330_v27 }
 0x1f9   : > { %v1635_v29 = vmax.f32 %v1571_v17, 0.0  ;;  %v1430_v33 = vld [vmem:[#allocation2 + $0x1a0] sm:$0xff]  ;;  %v1469_v41 = vmul.f32 %v3295_v36, %v1398_v32  ;;  %v1399_v43 = vld [vmem:[#allocation2 + $0xa8] sm:$0xff]  ;;  %1334 = vst.msk [vmem:[#allocation2 + $0xb8] sm:$0xff] %vm316_vm0, %v1269_v34  ;;  %1366 = vst.msk [vmem:[#allocation2 + $0x1b8] sm:$0xff] %vm316_vm0, %v1301_v35 }
 0x1fa   : > { %v2299_v39 = vpack.c.bf16 %v1603_v28, %v1603_v28  ;;  %v1501_v42 = vmul.f32 %v3295_v36, %v1430_v33  ;;  %v1431_v44 = vld [vmem:[#allocation2 + $0x1a8] sm:$0xff]  ;;  %v1470_v45 = vmul.f32 %v3295_v36, %v1399_v43  ;;  %v407_v26 = vld [vmem:[#allocation2 + $0xd0] sm:$0xff]  ;;  %v408_v37 = vld [vmem:[#allocation2 + $0xd8] sm:$0xff] }
 0x1fb   : > { %v2331_v40 = vpack.c.bf16 %v1635_v29, %v1635_v29  ;;  %v1502_v47 = vmul.f32 %v3295_v36, %v1431_v44  ;;  %v1540_v48 = vadd.f32 %v3297_v46, %v1469_v41  ;;  %v439_v27 = vld [vmem:[#allocation2 + $0x1d0] sm:$0xff]  ;;  %v440_v38 = vld [vmem:[#allocation2 + $0x1d8] sm:$0xff] }
 0x1fc   : > { %1924 = vst.msk [vmem:[%s3312_s25 + $0x4c] sm:$0xf] %vm1904_vm1, %v2299_v39  ;;  %v1572_v49 = vadd.f32 %v3297_v46, %v1501_v42  ;;  %v1541_v52 = vadd.f32 %v3297_v46, %v1470_v45  ;;  %v1087_v56 = vpop.f32.mrb[48].mxu0  ;;  %v1215_v57 = vpop.f32.mrb[48].mxu1 }
 0x1fd   : > { %1956 = vst.msk [vmem:[%s3312_s25 + $0xcc] sm:$0xf] %vm1904_vm1, %v2331_v40  ;;  %v1573_v53 = vadd.f32 %v3297_v46, %v1502_v47  ;;  %v1604_v54 = vmax.f32 %v1540_v48, 0.0  ;;  %v1270_v60 = vadd.f32 %v1087_v56, %v405_v50  ;;  %v1302_v61 = vadd.f32 %v1215_v57, %v437_v51  ;;  %v1089_v62 = vpop.f32.mrb[49].mxu0  ;;  %v1217_v63 = vpop.f32.mrb[49].mxu1 }
 0x1fe   : > { %v1636_v55 = vmax.f32 %v1572_v49, 0.0  ;;  %v1605_v58 = vmax.f32 %v1541_v52, 0.0  ;;  %v1400_v4 = vld [vmem:[#allocation2 + $0xb0] sm:$0xff]  ;;  %v1090_v6 = vpop.f32.mrb[50].mxu0  ;;  %v1218_v7 = vpop.f32.mrb[50].mxu1 }
 0x1ff   : > { %v1637_v59 = vmax.f32 %v1573_v53, 0.0  ;;  %v2300_v2 = vpack.c.bf16 %v1604_v54, %v1604_v54  ;;  %v1432_v5 = vld [vmem:[#allocation2 + $0x1b0] sm:$0xff]  ;;  %v1471_v10 = vmul.f32 %v3295_v36, %v1400_v4  ;;  %1335 = vst.msk [vmem:[#allocation2 + $0xc0] sm:$0xff] %vm316_vm0, %v1270_v60  ;;  %1367 = vst.msk [vmem:[#allocation2 + $0x1c0] sm:$0xff] %vm316_vm0, %v1302_v61  ;;  %v1092_v12 = vpop.f32.mrb[51].mxu0  ;;  %v1220_v13 = vpop.f32.mrb[51].mxu1  ;;  %v1271_v16 = vadd.f32 %v1090_v6, %v406_v0 }
 0x200   : > { %v2332_v3 = vpack.c.bf16 %v1636_v55, %v1636_v55  ;;  %v2301_v8 = vpack.c.bf16 %v1605_v58, %v1605_v58  ;;  %v1503_v11 = vmul.f32 %v3295_v36, %v1432_v5  ;;  %v1401_v14 = vld [vmem:[#allocation2 + $0xb8] sm:$0xff]  ;;  %v1303_v17 = vadd.f32 %v1218_v7, %v438_v1  ;;  %v3548_v53 = vld [vmem:[#allocation9] ss:$0 sm:$0xff]  ;;  %v410_v4 = vld [vmem:[#allocation2 + $0xe8] sm:$0xff] }
 0x201   : > { %v2333_v9 = vpack.c.bf16 %v1637_v59, %v1637_v59  ;;  %1925 = vst.msk [vmem:[%s3312_s25 + $0x50] sm:$0xf] %vm1904_vm1, %v2300_v2  ;;  %v1433_v15 = vld [vmem:[#allocation2 + $0x1b8] sm:$0xff]  ;;  %v1542_v36 = vadd.f32 %v3297_v46, %v1471_v10  ;;  %v1472_v20 = vmul.f32 %v3528_v19, %v1401_v14  ;;  %v409_v60 = vld [vmem:[#allocation2 + $0xe0] sm:$0xff]  ;;  %v442_v5 = vld [vmem:[#allocation2 + $0x1e8] sm:$0xff] }
 0x202   : > { %1957 = vst.msk [vmem:[%s3312_s25 + $0xd0] sm:$0xf] %vm1904_vm1, %v2332_v3  ;;  %1926 = vst.msk [vmem:[%s3312_s25 + $0x54] sm:$0xf] %vm1904_vm1, %v2301_v8  ;;  %v1574_v18 = vadd.f32 %v3297_v46, %v1503_v11  ;;  %v1504_v21 = vmul.f32 %v3528_v19, %v1433_v15  ;;  %v441_v61 = vld [vmem:[#allocation2 + $0x1e0] sm:$0xff] }
 0x203   : > { %1958 = vst.msk [vmem:[%s3312_s25 + $0xd4] sm:$0xf] %vm1904_vm1, %v2333_v9  ;;  %v1606_v22 = vmax.f32 %v1542_v36, 0.0  ;;  %v1543_v24 = vadd.f32 %v3297_v46, %v1472_v20 }
 0x204   : > { %1336 = vst.msk [vmem:[#allocation2 + $0xc8] sm:$0xff] %vm316_vm0, %v1271_v16  ;;  %1368 = vst.msk [vmem:[#allocation2 + $0x1c8] sm:$0xff] %vm316_vm0, %v1303_v17  ;;  %v1638_v23 = vmax.f32 %v1574_v18, 0.0  ;;  %v1575_v25 = vadd.f32 %v3297_v46, %v1504_v21  ;;  %v1095_v28 = vpop.f32.mrb[52].mxu0  ;;  %v1223_v29 = vpop.f32.mrb[52].mxu1 }
 0x205   : > { %v2302_v30 = vpack.c.bf16 %v1606_v22, %v1606_v22  ;;  %v1607_v32 = vmax.f32 %v1543_v24, 0.0  ;;  %v1097_v34 = vpop.f32.mrb[53].mxu0  ;;  %v1225_v35 = vpop.f32.mrb[53].mxu1  ;;  %v1272_v41 = vadd.f32 %v1095_v28, %v407_v26  ;;  %v1304_v42 = vadd.f32 %v1223_v29, %v439_v27 }
 0x206   : > { %v2334_v31 = vpack.c.bf16 %v1638_v23, %v1638_v23  ;;  %v1639_v33 = vmax.f32 %v1575_v25, 0.0  ;;  %v1402_v39 = vld [vmem:[#allocation2 + $0xc0] sm:$0xff]  ;;  %v1098_v46 = vpop.f32.mrb[54].mxu0  ;;  %v1226_v43 = vpop.f32.mrb[54].mxu1 }
 0x207   : > { %v1434_v40 = vld [vmem:[#allocation2 + $0x1c0] sm:$0xff]  ;;  %1927 = vst.msk [vmem:[%s3312_s25 + $0x58] sm:$0xf] %vm1904_vm1, %v2302_v30  ;;  %v2303_v44 = vpack.c.bf16 %v1607_v32, %v1607_v32  ;;  %v1473_v47 = vmul.f32 %v3528_v19, %v1402_v39  ;;  %v1100_v49 = vpop.f32.mrb[55].mxu0  ;;  %v1228_v50 = vpop.f32.mrb[55].mxu1  ;;  %v1273_v51 = vadd.f32 %v1098_v46, %v408_v37  ;;  %v1305_v52 = vadd.f32 %v1226_v43, %v440_v38  ;;  %v411_v32 = vld [vmem:[#allocation2 + $0xf0] sm:$0xff] }
 0x208   : > { %1959 = vst.msk [vmem:[%s3312_s25 + $0xd8] sm:$0xf] %vm1904_vm1, %v2334_v31  ;;  %v2335_v45 = vpack.c.bf16 %v1639_v33, %v1639_v33  ;;  %v1505_v48 = vmul.f32 %v3528_v19, %v1434_v40  ;;  %v443_v33 = vld [vmem:[#allocation2 + $0x1f0] sm:$0xff] }
 0x209   : > { %1337 = vst.msk [vmem:[#allocation2 + $0xd0] sm:$0xff] %vm316_vm0, %v1272_v41  ;;  %1369 = vst.msk [vmem:[#allocation2 + $0x1d0] sm:$0xff] %vm316_vm0, %v1304_v42  ;;  %v1544_v54 = vadd.f32 %v3548_v53, %v1473_v47  ;;  %v412_v41 = vld [vmem:[#allocation2 + $0xf8] sm:$0xff] }
 0x20a   : > { %1928 = vst.msk [vmem:[%s3312_s25 + $0x5c] sm:$0xf] %vm1904_vm1, %v2303_v44  ;;  %1960 = vst.msk [vmem:[%s3312_s25 + $0xdc] sm:$0xf] %vm1904_vm1, %v2335_v45  ;;  %v1576_v55 = vadd.f32 %v3548_v53, %v1505_v48  ;;  %v444_v42 = vld [vmem:[#allocation2 + $0x1f8] sm:$0xff] }
 0x20b   : > { %v1403_v56 = vld [vmem:[#allocation2 + $0xc8] sm:$0xff]  ;;  %1338 = vst.msk [vmem:[#allocation2 + $0xd8] sm:$0xff] %vm316_vm0, %v1273_v51  ;;  %1370 = vst.msk [vmem:[#allocation2 + $0x1d8] sm:$0xff] %vm316_vm0, %v1305_v52  ;;  %v1608_v62 = vmax.f32 %v1544_v54, 0.0 }
 0x20c   : > { %v1435_v57 = vld [vmem:[#allocation2 + $0x1c8] sm:$0xff]  ;;  %v1474_v58 = vmul.f32 %v3528_v19, %v1403_v56  ;;  %v1640_v63 = vmax.f32 %v1576_v55, 0.0  ;;  %v1103_v2 = vpop.f32.mrb[56].mxu0  ;;  %v1231_v3 = vpop.f32.mrb[56].mxu1 }
 0x20d   : > { %v1506_v59 = vmul.f32 %v3528_v19, %v1435_v57  ;;  %v2304_v6 = vpack.c.bf16 %v1608_v62, %v1608_v62  ;;  %v1274_v8 = vadd.f32 %v1103_v2, %v409_v60  ;;  %v1306_v9 = vadd.f32 %v1231_v3, %v441_v61  ;;  %v1105_v10 = vpop.f32.mrb[57].mxu0  ;;  %v1233_v11 = vpop.f32.mrb[57].mxu1 }
 0x20e   : > { %v1545_v0 = vadd.f32 %v3548_v53, %v1474_v58  ;;  %v2336_v7 = vpack.c.bf16 %v1640_v63, %v1640_v63  ;;  %v1106_v14 = vpop.f32.mrb[58].mxu0  ;;  %v1234_v15 = vpop.f32.mrb[58].mxu1 }
 0x20f   : > { %v1577_v1 = vadd.f32 %v3548_v53, %v1506_v59  ;;  %1929 = vst.msk [vmem:[%s3312_s25 + $0x60] sm:$0xf] %vm1904_vm1, %v2304_v6  ;;  %v1275_v36 = vadd.f32 %v1106_v14, %v410_v4  ;;  %v1307_v18 = vadd.f32 %v1234_v15, %v442_v5  ;;  %v1108_v20 = vpop.f32.mrb[59].mxu0  ;;  %v1236_v21 = vpop.f32.mrb[59].mxu1 }
 0x210   : > { %v1609_v12 = vmax.f32 %v1545_v0, 0.0  ;;  %1961 = vst.msk [vmem:[%s3312_s25 + $0xe0] sm:$0xf] %vm1904_vm1, %v2336_v7  ;;  %v1404_v16 = vld [vmem:[#allocation2 + $0xd0] sm:$0xff] }
 0x211   : > { %v1641_v13 = vmax.f32 %v1577_v1, 0.0  ;;  %v1436_v17 = vld [vmem:[#allocation2 + $0x1d0] sm:$0xff]  ;;  %1339 = vst.msk [vmem:[#allocation2 + $0xe0] sm:$0xff] %vm316_vm0, %v1274_v8  ;;  %1371 = vst.msk [vmem:[#allocation2 + $0x1e0] sm:$0xff] %vm316_vm0, %v1306_v9  ;;  %v1475_v24 = vmul.f32 %v3528_v19, %v1404_v16 }
 0x212   : > { %v2305_v22 = vpack.c.bf16 %v1609_v12, %v1609_v12  ;;  %v1507_v25 = vmul.f32 %v3528_v19, %v1436_v17  ;;  %v1405_v26 = vld [vmem:[#allocation2 + $0xd8] sm:$0xff]  ;;  %1340 = vst.msk [vmem:[#allocation2 + $0xe8] sm:$0xff] %vm316_vm0, %v1275_v36  ;;  %1372 = vst.msk [vmem:[#allocation2 + $0x1e8] sm:$0xff] %vm316_vm0, %v1307_v18 }
 0x213   : > { %v2337_v23 = vpack.c.bf16 %v1641_v13, %v1641_v13  ;;  %v1437_v27 = vld [vmem:[#allocation2 + $0x1d8] sm:$0xff]  ;;  %v1546_v28 = vadd.f32 %v3548_v53, %v1475_v24  ;;  %v1476_v30 = vmul.f32 %v3528_v19, %v1405_v26 }
 0x214   : > { %1930 = vst.msk [vmem:[%s3312_s25 + $0x64] sm:$0xf] %vm1904_vm1, %v2305_v22  ;;  %v1578_v29 = vadd.f32 %v3548_v53, %v1507_v25  ;;  %v1508_v31 = vmul.f32 %v3528_v19, %v1437_v27  ;;  %v1111_v39 = vpop.f32.mrb[60].mxu0  ;;  %v1239_v40 = vpop.f32.mrb[60].mxu1 }
 0x215   : > { %1962 = vst.msk [vmem:[%s3312_s25 + $0xe4] sm:$0xf] %vm1904_vm1, %v2337_v23  ;;  %v1610_v34 = vmax.f32 %v1546_v28, 0.0  ;;  %v1547_v37 = vadd.f32 %v3548_v53, %v1476_v30  ;;  %v1276_v46 = vadd.f32 %v1111_v39, %v411_v32  ;;  %v1308_v43 = vadd.f32 %v1239_v40, %v443_v33  ;;  %v1113_v44 = vpop.f32.mrb[61].mxu0  ;;  %v1241_v45 = vpop.f32.mrb[61].mxu1 }
 0x216   : > { %v1642_v35 = vmax.f32 %v1578_v29, 0.0  ;;  %v1579_v38 = vadd.f32 %v3548_v53, %v1508_v31  ;;  %v1114_v54 = vpop.f32.mrb[62].mxu0  ;;  %v1242_v55 = vpop.f32.mrb[62].mxu1 }
 0x217   : > { %v2306_v47 = vpack.c.bf16 %v1610_v34, %v1610_v34  ;;  %v1611_v49 = vmax.f32 %v1547_v37, 0.0  ;;  %1341 = vst.msk [vmem:[#allocation2 + $0xf0] sm:$0xff] %vm316_vm0, %v1276_v46  ;;  %1373 = vst.msk [vmem:[#allocation2 + $0x1f0] sm:$0xff] %vm316_vm0, %v1308_v43  ;;  %v1277_v58 = vadd.f32 %v1114_v54, %v412_v41  ;;  %v1309_v59 = vadd.f32 %v1242_v55, %v444_v42  ;;  %v1116_v60 = vpop.f32.mrb[63].mxu0  ;;  %v1244_v61 = vpop.f32.mrb[63].mxu1 }
 0x218   : > { %v2338_v48 = vpack.c.bf16 %v1642_v35, %v1642_v35  ;;  %v1643_v50 = vmax.f32 %v1579_v38, 0.0  ;;  %v1406_v51 = vld [vmem:[#allocation2 + $0xe0] sm:$0xff] }
 0x219   : > { %v1438_v52 = vld [vmem:[#allocation2 + $0x1e0] sm:$0xff]  ;;  %v1477_v56 = vmul.f32 %v3528_v19, %v1406_v51  ;;  %1931 = vst.msk [vmem:[%s3312_s25 + $0x68] sm:$0xf] %vm1904_vm1, %v2306_v47  ;;  %v2307_v62 = vpack.c.bf16 %v1611_v49, %v1611_v49  ;;  %v1407_v0 = vld [vmem:[#allocation2 + $0xe8] sm:$0xff] }
 0x21a   : > { %v1509_v57 = vmul.f32 %v3528_v19, %v1438_v52  ;;  %1963 = vst.msk [vmem:[%s3312_s25 + $0xe8] sm:$0xf] %vm1904_vm1, %v2338_v48  ;;  %v2339_v63 = vpack.c.bf16 %v1643_v50, %v1643_v50  ;;  %v1439_v1 = vld [vmem:[#allocation2 + $0x1e8] sm:$0xff]  ;;  %v1478_v4 = vmul.f32 %v3528_v19, %v1407_v0 }
 0x21b   : > { %v1548_v2 = vadd.f32 %v3548_v53, %v1477_v56  ;;  %v1510_v5 = vmul.f32 %v3528_v19, %v1439_v1  ;;  %1342 = vst.msk [vmem:[#allocation2 + $0xf8] sm:$0xff] %vm316_vm0, %v1277_v58  ;;  %1374 = vst.msk [vmem:[#allocation2 + $0x1f8] sm:$0xff] %vm316_vm0, %v1309_v59 }
 0x21c   : > { %v1580_v3 = vadd.f32 %v3548_v53, %v1509_v57  ;;  %1932 = vst.msk [vmem:[%s3312_s25 + $0x6c] sm:$0xf] %vm1904_vm1, %v2307_v62  ;;  %1964 = vst.msk [vmem:[%s3312_s25 + $0xec] sm:$0xf] %vm1904_vm1, %v2339_v63  ;;  %v1549_v8 = vadd.f32 %v3548_v53, %v1478_v4 }
 0x21d   : > { %v1612_v6 = vmax.f32 %v1548_v2, 0.0  ;;  %v1581_v9 = vadd.f32 %v3548_v53, %v1510_v5 }
 0x21e   : > { %v1644_v7 = vmax.f32 %v1580_v3, 0.0  ;;  %v1613_v12 = vmax.f32 %v1549_v8, 0.0  ;;  %v1408_v14 = vld [vmem:[#allocation2 + $0xf0] sm:$0xff] }
 0x21f   : > { %v2308_v10 = vpack.c.bf16 %v1612_v6, %v1612_v6  ;;  %v1645_v13 = vmax.f32 %v1581_v9, 0.0  ;;  %v1440_v15 = vld [vmem:[#allocation2 + $0x1f0] sm:$0xff]  ;;  %v1479_v36 = vmul.f32 %v3528_v19, %v1408_v14 }
 0x220   : > { %v2340_v11 = vpack.c.bf16 %v1644_v7, %v1644_v7  ;;  %v2309_v16 = vpack.c.bf16 %v1613_v12, %v1613_v12  ;;  %v1511_v18 = vmul.f32 %v3528_v19, %v1440_v15 }
 0x221   : > { %1933 = vst.msk [vmem:[%s3312_s25 + $0x70] sm:$0xf] %vm1904_vm1, %v2308_v10  ;;  %v2341_v17 = vpack.c.bf16 %v1645_v13, %v1645_v13  ;;  %v1550_v22 = vadd.f32 %v3548_v53, %v1479_v36 }
 0x222   : > { %1965 = vst.msk [vmem:[%s3312_s25 + $0xf0] sm:$0xf] %vm1904_vm1, %v2340_v11  ;;  %v1409_v20 = vld [vmem:[#allocation2 + $0xf8] sm:$0xff]  ;;  %1934 = vst.msk [vmem:[%s3312_s25 + $0x74] sm:$0xf] %vm1904_vm1, %v2309_v16  ;;  %v1582_v23 = vadd.f32 %v3548_v53, %v1511_v18 }
 0x223   : > { %v1441_v21 = vld [vmem:[#allocation2 + $0x1f8] sm:$0xff]  ;;  %1966 = vst.msk [vmem:[%s3312_s25 + $0xf4] sm:$0xf] %vm1904_vm1, %v2341_v17  ;;  %v1480_v24 = vmul.f32 %v3528_v19, %v1409_v20  ;;  %v1614_v26 = vmax.f32 %v1550_v22, 0.0 }
 0x224   : > { %v1512_v25 = vmul.f32 %v3528_v19, %v1441_v21  ;;  %v1646_v27 = vmax.f32 %v1582_v23, 0.0 }
 0x225   : > { %v1551_v28 = vadd.f32 %v3548_v53, %v1480_v24  ;;  %v2310_v30 = vpack.c.bf16 %v1614_v26, %v1614_v26 }
 0x226   : > { %v1583_v29 = vadd.f32 %v3548_v53, %v1512_v25  ;;  %v2342_v31 = vpack.c.bf16 %v1646_v27, %v1646_v27 }
 0x227   : > { %v1615_v32 = vmax.f32 %v1551_v28, 0.0  ;;  %1935 = vst.msk [vmem:[%s3312_s25 + $0x78] sm:$0xf] %vm1904_vm1, %v2310_v30 }
 0x228   : > { %v1647_v33 = vmax.f32 %v1583_v29, 0.0  ;;  %1967 = vst.msk [vmem:[%s3312_s25 + $0xf8] sm:$0xf] %vm1904_vm1, %v2342_v31 }
 0x229   : > { %v2311_v19 = vpack.c.bf16 %v1615_v32, %v1615_v32 }
 0x22a   : > { %v2343_v53 = vpack.c.bf16 %v1647_v33, %v1647_v33 }
 0x22b   : > { %1936 = vst.msk [vmem:[%s3312_s25 + $0x7c] sm:$0xf] %vm1904_vm1, %v2311_v19 }
 0x22c   : > { %1968 = vst.msk [vmem:[%s3312_s25 + $0xfc] sm:$0xf] %vm1904_vm1, %v2343_v53 }
 0x22d   : > { %2719 = shalt.err (!%p2716_p13)
}
 0x22e   : > { %s2720_s29 = scalar_lea.hbm %s3619_s6, 4096  ;;  %s2724_s8 = scalar_lea.hbm %s3681_s4, 16384 }
 0x22f   : > { %p2721_p4 = scmp.ne.s32.totalorder %s3619_s6, %s2720_s29  ;;  %p2725_p11 = scmp.lt.u32.totalorder %s3619_s6, %s3681_s4 }
 0x230   : > { %p2726_p1 = scmp.lt.u32.totalorder %s2724_s8, %s2720_s29  ;;  %p2728_p12 = scmp.lt.u32.totalorder %s2720_s29, %s3619_s6 }
 0x231   : > { %p2722_p2 = pnand %p2721_p4, %p2987_p0 }
 0x232   : > { %p2727_p10 = por %p2726_p1, %p2725_p11 }
 0x233   : > { %p2723_p8 = pneg %p2722_p2 }
 0x234   : > { %p2729_p6 = por %p2728_p12, %p2727_p10 }
 0x236   : > { %p2730_p3 = pnand %p2729_p6, %p2723_p8 }
 0x238   : > { %2733 = shalt.err (!%p2730_p3)
}
 0x239   : > { %s2809_s25 = smov 64   ;;  %s2810_s27 = smov 4  }
 0x23a   : > { %2391 = dma.vmem_to_hbm [thread:$0]  (%p2987_p0), %s3621_s24, 4096, %s3619_s6, %s1970_s18, %s2809_s25, %s2809_s25, %s2810_s27  }
 0x23b PF: > { %s3701_s22 = sld [smem:[#allocation16_spill]]  ;;  %p2418_p5 = scmp.ge.s32.totalorder %s2796_s20, 2 }
 0x23c   : > { %s1999_s28 = sand.u32 1, %s2776_s15  }
 0x23d   : > { %s2000_s7 = scalar_lea.sflag [#allocation5], %s1999_s28 }
 0x241   : > { %p3702_p7 = scmp.ne.s32.totalorder %s3701_s22, 0 }
 0x243   : > { %p2408_p9 = pnand %p2418_p5, %p3702_p7 }
 0x245   : > { %2771 = dma.done.wait (!%p2408_p9), %s2000_s7, 4096  }
 0x246   : > { %2773 = vsyncadd (!%p2408_p9), %s2000_s7, 4294963200  ;;  %s22_s20 = sadd.s32 1, %s2796_s20   ;;  %s3703_s15 = smov %s2780_s16 }
 0x247   : > { %p19_p13 = scmp.ge.s32.totalorder %s22_s20, 6   ;;  %s3704_s16 = smov %s2784_s17 }
 0x248   : > { %s3705_s17 = smov %s2999_s11  ;;  %s3706_s18 = smov %s2792_s19 }
 0x249   : > { %s3707_s19 = smov %s3709_s26  ;;  %21 = sbr.rel (!%p19_p13) target bundleno = 8 (0x8), region = 104 }
 0x250   :  { %2005 = vsyncpa [#allocation4], 1 }
 0x251   :  { %2007 = vsyncpa [#allocation4 + $0x1], 1 }
 0x252   :  { %2008 = vsyncpa [#allocation7], 1 }
 0x253   :  { %2009 = vsyncpa [#allocation10], 1 }
 0x254   :  { %2010 = vsyncpa [#allocation5], 1 }
 0x255   :  { %2012 = vsyncpa [#allocation5 + $0x1], 1 }

</bundles_post_ra>
